<compile_context>
chip_gen: v6e
topology: v6e:2x2x1
jax: 0.10.0
libtpu: 0.0.40
codegen_flags: <defaults>
</compile_context>

<pallas_src>
import math
from functools import partial

import jax
import jax.numpy as jnp
from jax import lax
from jax.experimental import pallas as pl
from jax.experimental.pallas import tpu as pltpu

LN_EPS = 1e-5  # torch.nn.LayerNorm default


def _mhca_kernel(q_ref, k_ref, v_ref,
                 wq_ref, wk_ref, wv_ref, wc_ref,
                 pp_ref, o_ref, kp_ref, vp_ref,
                 *, n_head, add_residual, scale):
    # q_ref : (1, TQ, Dq)     query-row tile (changes every grid step)
    # k_ref : (1, Lkv, De)    full encoder keys for this batch element
    # v_ref : (1, Lkv, De)    full encoder values
    # w*_ref: pre-transposed weights ([D_in, d_model] / [d_model, d_model])
    # pp_ref: (8, d_model) packed rows: bq, bk, bv, bc, gamma, beta, 0, 0
    # kp_ref/vp_ref: (Lkv, d_model) f32 scratch caching projected K/V per batch
    bq = pp_ref[0:1, :].astype(jnp.float32)
    bk = pp_ref[1:2, :].astype(jnp.float32)
    bv = pp_ref[2:3, :].astype(jnp.float32)
    bc = pp_ref[3:4, :].astype(jnp.float32)
    gamma = pp_ref[4:5, :].astype(jnp.float32)
    beta = pp_ref[5:6, :].astype(jnp.float32)

    # K/V projections depend only on the batch element: compute them once per
    # batch (q-tile axis is innermost + "arbitrary", so i==0 is its first
    # visit for each b) and reuse the scratch across all q tiles.
    @pl.when(pl.program_id(1) == 0)
    def _():
        kp_ref[...] = jnp.dot(k_ref[0], wk_ref[...],
                              preferred_element_type=jnp.float32) + bk
        vp_ref[...] = jnp.dot(v_ref[0], wv_ref[...],
                              preferred_element_type=jnp.float32) + bv

    q_in = q_ref[0]
    qp = jnp.dot(q_in, wq_ref[...], preferred_element_type=jnp.float32) + bq
    kp = kp_ref[...]
    vp = vp_ref[...]

    d_model = qp.shape[-1]
    d_head = d_model // n_head

    # Per-head scaled dot-product attention (static head loop, static slices).
    head_outs = []
    for h in range(n_head):
        lo = h * d_head
        q_h = qp[:, lo:lo + d_head]
        k_h = kp[:, lo:lo + d_head]
        v_h = vp[:, lo:lo + d_head]
        # scores = q_h @ k_h^T * (1/sqrt(d_head)); contract head dim directly.
        s = lax.dot_general(q_h, k_h, (((1,), (1,)), ((), ())),
                            preferred_element_type=jnp.float32) * scale
        # TODO(synk): optional attention mask (masked_fill(mask==0, -10000)) not implemented.
        s = s - jnp.max(s, axis=-1, keepdims=True)
        p = jnp.exp(s)
        p = p * pl.reciprocal(jnp.sum(p, axis=-1, keepdims=True), approx=True)
        head_outs.append(jnp.dot(p, v_h, preferred_element_type=jnp.float32))
    attn = jnp.concatenate(head_outs, axis=-1)  # (TQ, d_model) == concat(heads)

    # Output projection (feed MXU in the weight dtype -> bf16 weights stay bf16).
    out = jnp.dot(attn.astype(wc_ref.dtype), wc_ref[...],
                  preferred_element_type=jnp.float32) + bc
    # TODO(synk): training-mode dropout (p=rate) not applied; eval semantics only.

    if add_residual:  # static: d_model == decode_dim
        out = out + q_in.astype(jnp.float32)

    # LayerNorm over the feature dim (f32 VPU math, matches torch biased var).
    mean = jnp.mean(out, axis=-1, keepdims=True)
    ctr = out - mean
    var = jnp.mean(ctr * ctr, axis=-1, keepdims=True)
    y = ctr * lax.rsqrt(var + LN_EPS)
    y = y * gamma + beta

    o_ref[0] = y.astype(o_ref.dtype)


def multihead_cross_attention(q, k, v, params, *, n_head, tile_lq=256, mask=None):
    """Eval-mode MultiHeadCrossAttention forward.

    q: [B, Lq, decode_dim]; k, v: [B, Lkv, encode_dim]
    params: torch-layout tensors: wq [d_model, decode_dim], bq [d_model],
            wk/bk, wv/bv (encode_dim), wc [d_model, d_model], bc,
            gamma, beta [d_model].
    """
    assert mask is None  # TODO(synk): mask path not implemented
    B, Lq, Dq = q.shape
    _, Lkv, De = k.shape
    d_model = params["wq"].shape[0]
    assert d_model % n_head == 0

    # Hoisted weight transposes (do once outside the jit hot path in production).
    wq_t = params["wq"].T   # [Dq, d_model]
    wk_t = params["wk"].T   # [De, d_model]
    wv_t = params["wv"].T   # [De, d_model]
    wc_t = params["wc"].T   # [d_model, d_model]

    # Pack all per-feature vectors into one sublane-aligned (8, d_model) array.
    pp = jnp.stack([params["bq"], params["bk"], params["bv"], params["bc"],
                    params["gamma"], params["beta"]]).astype(jnp.float32)
    pp = jnp.pad(pp, ((0, 2), (0, 0)))

    # Query-row tiling: big tiles (amortize grid overhead, fill MXU M dim),
    # rounded to the 8-sublane granule; pad Lq up to a tile multiple.
    lq8 = ((Lq + 7) // 8) * 8
    tile_q = max(8, min((tile_lq // 8) * 8, lq8))
    lq_padded = ((lq8 + tile_q - 1) // tile_q) * tile_q
    q_p = jnp.pad(q, ((0, 0), (0, lq_padded - Lq), (0, 0))) if lq_padded != Lq else q

    in_item = q.dtype.itemsize
    w_item = wq_t.dtype.itemsize

    # VMEM budget: double-buffered per-step tiles + (double-buffered) weights +
    # K/V projection scratch + f32 intermediates, with headroom; clamp to
    # v7x physical 64 MiB.
    tiles_b = 2 * (tile_q * Dq + 2 * Lkv * De + tile_q * d_model) * in_item
    weights_b = 2 * (Dq * d_model + 2 * De * d_model + d_model * d_model) * w_item \
        + 2 * 8 * d_model * 4
    scratch_b = 2 * Lkv * d_model * 4
    interm_b = 4 * (2 * tile_q * d_model + 2 * Lkv * d_model
                    + 2 * tile_q * Lkv + tile_q * Dq)
    vmem_limit = int(min(max(1.5 * (tiles_b + weights_b + scratch_b + interm_b),
                             32 << 20), 64 << 20))

    # Advisory cost estimate so XLA schedules surrounding ops around the kernel.
    flops = 2 * B * (Lq * Dq * d_model + 2 * Lkv * De * d_model
                     + 2 * Lq * Lkv * d_model + Lq * d_model * d_model)
    transcendentals = B * Lq * (Lkv + 1)  # softmax exp + LN rsqrt
    bytes_accessed = (B * (Lq * Dq + 2 * Lkv * De + Lq * d_model) * in_item
                      + (Dq * d_model + 2 * De * d_model + d_model * d_model
                         + 8 * d_model) * w_item)
    cost = pl.CostEstimate(flops=int(flops),
                           transcendentals=int(transcendentals),
                           bytes_accessed=int(bytes_accessed))

    kernel = partial(_mhca_kernel, n_head=n_head,
                     add_residual=(d_model == Dq),
                     scale=1.0 / math.sqrt(d_model // n_head))

    out = pl.pallas_call(
        kernel,
        out_shape=jax.ShapeDtypeStruct((B, lq_padded, d_model), q.dtype),
        grid_spec=pltpu.PrefetchScalarGridSpec(
            num_scalar_prefetch=0,
            grid=(B, lq_padded // tile_q),
            in_specs=[
                pl.BlockSpec((1, tile_q, Dq), lambda b, i: (b, i, 0)),
                pl.BlockSpec((1, Lkv, De), lambda b, i: (b, 0, 0)),
                pl.BlockSpec((1, Lkv, De), lambda b, i: (b, 0, 0)),
                # Invariant operands (constant block index -> no re-DMA across
                # the grid).  For very large d_model add pipeline_mode=
                # pl.Buffered(1) here to drop their double-buffer allocation.
                pl.BlockSpec((Dq, d_model), lambda b, i: (0, 0)),
                pl.BlockSpec((De, d_model), lambda b, i: (0, 0)),
                pl.BlockSpec((De, d_model), lambda b, i: (0, 0)),
                pl.BlockSpec((d_model, d_model), lambda b, i: (0, 0)),
                pl.BlockSpec((8, d_model), lambda b, i: (0, 0)),
            ],
            out_specs=pl.BlockSpec((1, tile_q, d_model), lambda b, i: (b, i, 0)),
            scratch_shapes=[pltpu.VMEM((Lkv, d_model), jnp.float32),
                            pltpu.VMEM((Lkv, d_model), jnp.float32)],
        ),
        compiler_params=pltpu.CompilerParams(
            # q-tile axis is "arbitrary" (sequential per core) so the cached
            # K/V projections in scratch remain valid across q tiles.
            dimension_semantics=("parallel", "arbitrary"),
            vmem_limit_bytes=vmem_limit),
        cost_estimate=cost,
    )(q_p, k, v, wq_t, wk_t, wv_t, wc_t, pp)

    return out[:, :Lq, :]


if __name__ == "__main__":
    # Small shapes consistent with the module; d_model kept at 128 so the
    # output feature dim is lane-dense (128-lane vregs, unmasked stores).
    batch, len_q, len_kv = 2, 16, 24
    encode_dim, decode_dim, d_model, n_head = 64, 128, 128, 4

    key = jax.random.PRNGKey(0)
    keys = jax.random.split(key, 7)
    q = jax.random.normal(keys[0], (batch, len_q, decode_dim), jnp.float32)
    k = jax.random.normal(keys[1], (batch, len_kv, encode_dim), jnp.float32)
    v = jax.random.normal(keys[2], (batch, len_kv, encode_dim), jnp.float32)

    def lin_init(kk, fan_out, fan_in):
        bound = 1.0 / math.sqrt(fan_in)
        kw, kb = jax.random.split(kk)
        w = jax.random.uniform(kw, (fan_out, fan_in), jnp.float32, -bound, bound)
        b = jax.random.uniform(kb, (fan_out,), jnp.float32, -bound, bound)
        return w, b

    wq, bq = lin_init(keys[3], d_model, decode_dim)
    wk, bk = lin_init(keys[4], d_model, encode_dim)
    wv, bv = lin_init(keys[5], d_model, encode_dim)
    wc, bc = lin_init(keys[6], d_model, d_model)
    gamma = jnp.ones((d_model,), jnp.float32)   # nn.LayerNorm init
    beta = jnp.zeros((d_model,), jnp.float32)

    params = dict(wq=wq, bq=bq, wk=wk, bk=bk, wv=wv, bv=bv,
                  wc=wc, bc=bc, gamma=gamma, beta=beta)

    out = multihead_cross_attention(q, k, v, params, n_head=n_head)
    jax.block_until_ready(out)

    # Pure-JAX reference (eval-mode dropout == identity, mask=None).
    def split(t):
        B, L, D = t.shape
        return t.reshape(B, L, n_head, D // n_head).transpose(0, 2, 1, 3)

    qp = q @ wq.T + bq
    kp = k @ wk.T + bk
    vp = v @ wv.T + bv
    qh, kh, vh = split(qp), split(kp), split(vp)
    s = (qh @ kh.transpose(0, 1, 3, 2)) / math.sqrt(d_model // n_head)
    p = jax.nn.softmax(s, axis=-1)
    o = (p @ vh).transpose(0, 2, 1, 3).reshape(batch, len_q, d_model)
    o = o @ wc.T + bc
    o = o + q  # d_model == decode_dim -> residual path
    mu = o.mean(-1, keepdims=True)
    var = ((o - mu) ** 2).mean(-1, keepdims=True)
    ref = (o - mu) / jnp.sqrt(var + LN_EPS) * gamma + beta

    err = float(jnp.max(jnp.abs(out - ref)))
    assert jnp.allclose(out, ref, atol=5e-3, rtol=5e-3), f"max abs err {err}"
    print("KERNEL_OK")
</pallas_src>

<mosaic_0001>
module attributes {stable_mosaic.version = 11 : i64} {
  func.func @_mhca_kernel(%arg0: i32, %arg1: i32, %arg2: memref<1x16x128xf32, #tpu.memory_space<vmem>>, %arg3: memref<1x24x64xf32, #tpu.memory_space<vmem>>, %arg4: memref<1x24x64xf32, #tpu.memory_space<vmem>>, %arg5: memref<128x128xf32, #tpu.memory_space<vmem>>, %arg6: memref<64x128xf32, #tpu.memory_space<vmem>>, %arg7: memref<64x128xf32, #tpu.memory_space<vmem>>, %arg8: memref<128x128xf32, #tpu.memory_space<vmem>>, %arg9: memref<8x128xf32, #tpu.memory_space<vmem>>, %arg10: memref<1x16x128xf32, #tpu.memory_space<vmem>>, %arg11: memref<24x128xf32, #tpu.memory_space<vmem>>, %arg12: memref<24x128xf32, #tpu.memory_space<vmem>>) attributes {dimension_semantics = [#tpu.dimension_semantics<parallel>, #tpu.dimension_semantics<arbitrary>], iteration_bounds = array<i64: 2, 1>, scalar_prefetch = 0 : i64, scratch_operands = 2 : i64, tpu.core_type = #tpu.core_type<tc>, window_params = [{transform_indices = @transform_0, window_bounds = array<i64: 1, 16, 128>}, {transform_indices = @transform_1, window_bounds = array<i64: 1, 24, 64>}, {transform_indices = @transform_2, window_bounds = array<i64: 1, 24, 64>}, {pipeline_mode = #tpu.pipeline_mode<synchronous>, transform_indices = @transform_3, window_bounds = array<i64: 128, 128>}, {pipeline_mode = #tpu.pipeline_mode<synchronous>, transform_indices = @transform_4, window_bounds = array<i64: 64, 128>}, {pipeline_mode = #tpu.pipeline_mode<synchronous>, transform_indices = @transform_5, window_bounds = array<i64: 64, 128>}, {pipeline_mode = #tpu.pipeline_mode<synchronous>, transform_indices = @transform_6, window_bounds = array<i64: 128, 128>}, {pipeline_mode = #tpu.pipeline_mode<synchronous>, transform_indices = @transform_7, window_bounds = array<i64: 8, 128>}, {transform_indices = @transform_8, window_bounds = array<i64: 1, 16, 128>}]} {
    %c0 = arith.constant 0 : index
    %c0_0 = arith.constant 0 : index
    %0 = vector.load %arg9[%c0, %c0_0] : memref<8x128xf32, #tpu.memory_space<vmem>>, vector<1x128xf32>
    %c1 = arith.constant 1 : index
    %c0_1 = arith.constant 0 : index
    %1 = vector.load %arg9[%c1, %c0_1] : memref<8x128xf32, #tpu.memory_space<vmem>>, vector<1x128xf32>
    %c2 = arith.constant 2 : index
    %c0_2 = arith.constant 0 : index
    %2 = vector.load %arg9[%c2, %c0_2] : memref<8x128xf32, #tpu.memory_space<vmem>>, vector<1x128xf32>
    %c3 = arith.constant 3 : index
    %c0_3 = arith.constant 0 : index
    %3 = vector.load %arg9[%c3, %c0_3] : memref<8x128xf32, #tpu.memory_space<vmem>>, vector<1x128xf32>
    %c4 = arith.constant 4 : index
    %c0_4 = arith.constant 0 : index
    %4 = vector.load %arg9[%c4, %c0_4] : memref<8x128xf32, #tpu.memory_space<vmem>>, vector<1x128xf32>
    %c5 = arith.constant 5 : index
    %c0_5 = arith.constant 0 : index
    %5 = vector.load %arg9[%c5, %c0_5] : memref<8x128xf32, #tpu.memory_space<vmem>>, vector<1x128xf32>
    %c0_i32 = arith.constant 0 : i32
    %6 = arith.cmpi eq, %arg1, %c0_i32 : i32
    %7 = arith.extui %6 : i1 to i32
    %c0_i32_6 = arith.constant 0 : i32
    %8 = arith.cmpi ne, %7, %c0_i32_6 : i32
    scf.if %8 {
      %c0_47 = arith.constant 0 : index
      %c0_48 = arith.constant 0 : index
      %c0_49 = arith.constant 0 : index
      %114 = vector.load %arg3[%c0_47, %c0_48, %c0_49] : memref<1x24x64xf32, #tpu.memory_space<vmem>>, vector<1x24x64xf32>
      %115 = vector.shape_cast %114 : vector<1x24x64xf32> to vector<24x64xf32>
      %c0_50 = arith.constant 0 : index
      %c0_51 = arith.constant 0 : index
      %116 = vector.load %arg6[%c0_50, %c0_51] : memref<64x128xf32, #tpu.memory_space<vmem>>, vector<64x128xf32>
      %cst_52 = arith.constant dense<0.000000e+00> : vector<24x128xf32>
      %117 = tpu.matmul %115, %116, %cst_52 {dimension_numbers = #tpu.dot_dimension_numbers<[1], [0], [0], [1], [0, 0, 1, 1], [], []>} : vector<24x64xf32>, vector<64x128xf32>, vector<24x128xf32> -> vector<24x128xf32>
      %118 = vector.broadcast %1 : vector<1x128xf32> to vector<24x128xf32>
      %119 = arith.addf %117, %118 : vector<24x128xf32>
      %c0_53 = arith.constant 0 : index
      %c0_54 = arith.constant 0 : index
      %120 = vector.load %arg11[%c0_53, %c0_54] : memref<24x128xf32, #tpu.memory_space<vmem>>, vector<24x128xf32>
      tpu.vector_store %arg11[%c0_53, %c0_54], %119 {strides = array<i32>} : memref<24x128xf32, #tpu.memory_space<vmem>>, vector<24x128xf32>,
      %c0_55 = arith.constant 0 : index
      %c0_56 = arith.constant 0 : index
      %c0_57 = arith.constant 0 : index
      %121 = vector.load %arg4[%c0_55, %c0_56, %c0_57] : memref<1x24x64xf32, #tpu.memory_space<vmem>>, vector<1x24x64xf32>
      %122 = vector.shape_cast %121 : vector<1x24x64xf32> to vector<24x64xf32>
      %c0_58 = arith.constant 0 : index
      %c0_59 = arith.constant 0 : index
      %123 = vector.load %arg7[%c0_58, %c0_59] : memref<64x128xf32, #tpu.memory_space<vmem>>, vector<64x128xf32>
      %cst_60 = arith.constant dense<0.000000e+00> : vector<24x128xf32>
      %124 = tpu.matmul %122, %123, %cst_60 {dimension_numbers = #tpu.dot_dimension_numbers<[1], [0], [0], [1], [0, 0, 1, 1], [], []>} : vector<24x64xf32>, vector<64x128xf32>, vector<24x128xf32> -> vector<24x128xf32>
      %125 = vector.broadcast %2 : vector<1x128xf32> to vector<24x128xf32>
      %126 = arith.addf %124, %125 : vector<24x128xf32>
      %c0_61 = arith.constant 0 : index
      %c0_62 = arith.constant 0 : index
      %127 = vector.load %arg12[%c0_61, %c0_62] : memref<24x128xf32, #tpu.memory_space<vmem>>, vector<24x128xf32>
      tpu.vector_store %arg12[%c0_61, %c0_62], %126 {strides = array<i32>} : memref<24x128xf32, #tpu.memory_space<vmem>>, vector<24x128xf32>,
    } else {
    }
    %c0_7 = arith.constant 0 : index
    %c0_8 = arith.constant 0 : index
    %c0_9 = arith.constant 0 : index
    %9 = vector.load %arg2[%c0_7, %c0_8, %c0_9] : memref<1x16x128xf32, #tpu.memory_space<vmem>>, vector<1x16x128xf32>
    %10 = vector.shape_cast %9 : vector<1x16x128xf32> to vector<16x128xf32>
    %c0_10 = arith.constant 0 : index
    %c0_11 = arith.constant 0 : index
    %11 = vector.load %arg5[%c0_10, %c0_11] : memref<128x128xf32, #tpu.memory_space<vmem>>, vector<128x128xf32>
    %cst = arith.constant dense<0.000000e+00> : vector<16x128xf32>
    %12 = tpu.matmul %10, %11, %cst {dimension_numbers = #tpu.dot_dimension_numbers<[1], [0], [0], [1], [0, 0, 1, 1], [], []>} : vector<16x128xf32>, vector<128x128xf32>, vector<16x128xf32> -> vector<16x128xf32>
    %13 = vector.broadcast %0 : vector<1x128xf32> to vector<16x128xf32>
    %14 = arith.addf %12, %13 : vector<16x128xf32>
    %c0_12 = arith.constant 0 : index
    %c0_13 = arith.constant 0 : index
    %15 = vector.load %arg11[%c0_12, %c0_13] : memref<24x128xf32, #tpu.memory_space<vmem>>, vector<24x128xf32>
    %c0_14 = arith.constant 0 : index
    %c0_15 = arith.constant 0 : index
    %16 = vector.load %arg12[%c0_14, %c0_15] : memref<24x128xf32, #tpu.memory_space<vmem>>, vector<24x128xf32>
    %17 = vector.extract_strided_slice %14 {offsets = [0, 0], sizes = [16, 32], strides = [1, 1]} : vector<16x128xf32> to vector<16x32xf32>
    %18 = vector.extract_strided_slice %15 {offsets = [0, 0], sizes = [24, 32], strides = [1, 1]} : vector<24x128xf32> to vector<24x32xf32>
    %19 = vector.extract_strided_slice %16 {offsets = [0, 0], sizes = [24, 32], strides = [1, 1]} : vector<24x128xf32> to vector<24x32xf32>
    %cst_16 = arith.constant dense<0.000000e+00> : vector<16x24xf32>
    %20 = tpu.matmul %17, %18, %cst_16 {dimension_numbers = #tpu.dot_dimension_numbers<[1], [1], [0], [0], [0, 0, 1, 0], [], []>} : vector<16x32xf32>, vector<24x32xf32>, vector<16x24xf32> -> vector<16x24xf32>
    %cst_17 = arith.constant 0.176776692 : f32
    %21 = vector.broadcast %cst_17 : f32 to vector<16x24xf32>
    %22 = arith.mulf %20, %21 : vector<16x24xf32>
    %cst_18 = arith.constant dense<0xFF800000> : vector<16xf32>
    %23 = vector.multi_reduction <maximumf>, %22, %cst_18 [1] : vector<16x24xf32> to vector<16xf32>
    %24 = vector.shape_cast %23 : vector<16xf32> to vector<16x1xf32>
    %25 = vector.broadcast %24 : vector<16x1xf32> to vector<16x24xf32>
    %26 = arith.subf %22, %25 : vector<16x24xf32>
    %27 = math.exp %26 : vector<16x24xf32>
    %cst_19 = arith.constant dense<0.000000e+00> : vector<16xf32>
    %28 = vector.multi_reduction <add>, %27, %cst_19 [1] : vector<16x24xf32> to vector<16xf32>
    %29 = vector.shape_cast %28 : vector<16xf32> to vector<16x1xf32>
    %30 = tpu.reciprocal %29 {approx = true} : vector<16x1xf32> -> vector<16x1xf32>
    %31 = vector.broadcast %30 : vector<16x1xf32> to vector<16x24xf32>
    %32 = arith.mulf %27, %31 : vector<16x24xf32>
    %cst_20 = arith.constant dense<0.000000e+00> : vector<16x32xf32>
    %33 = tpu.matmul %32, %19, %cst_20 {dimension_numbers = #tpu.dot_dimension_numbers<[1], [0], [0], [1], [0, 0, 1, 1], [], []>} : vector<16x24xf32>, vector<24x32xf32>, vector<16x32xf32> -> vector<16x32xf32>
    %34 = vector.extract_strided_slice %14 {offsets = [0, 32], sizes = [16, 32], strides = [1, 1]} : vector<16x128xf32> to vector<16x32xf32>
    %35 = vector.extract_strided_slice %15 {offsets = [0, 32], sizes = [24, 32], strides = [1, 1]} : vector<24x128xf32> to vector<24x32xf32>
    %36 = vector.extract_strided_slice %16 {offsets = [0, 32], sizes = [24, 32], strides = [1, 1]} : vector<24x128xf32> to vector<24x32xf32>
    %cst_21 = arith.constant dense<0.000000e+00> : vector<16x24xf32>
    %37 = tpu.matmul %34, %35, %cst_21 {dimension_numbers = #tpu.dot_dimension_numbers<[1], [1], [0], [0], [0, 0, 1, 0], [], []>} : vector<16x32xf32>, vector<24x32xf32>, vector<16x24xf32> -> vector<16x24xf32>
    %cst_22 = arith.constant 0.176776692 : f32
    %38 = vector.broadcast %cst_22 : f32 to vector<16x24xf32>
    %39 = arith.mulf %37, %38 : vector<16x24xf32>
    %cst_23 = arith.constant dense<0xFF800000> : vector<16xf32>
    %40 = vector.multi_reduction <maximumf>, %39, %cst_23 [1] : vector<16x24xf32> to vector<16xf32>
    %41 = vector.shape_cast %40 : vector<16xf32> to vector<16x1xf32>
    %42 = vector.broadcast %41 : vector<16x1xf32> to vector<16x24xf32>
    %43 = arith.subf %39, %42 : vector<16x24xf32>
    %44 = math.exp %43 : vector<16x24xf32>
    %cst_24 = arith.constant dense<0.000000e+00> : vector<16xf32>
    %45 = vector.multi_reduction <add>, %44, %cst_24 [1] : vector<16x24xf32> to vector<16xf32>
    %46 = vector.shape_cast %45 : vector<16xf32> to vector<16x1xf32>
    %47 = tpu.reciprocal %46 {approx = true} : vector<16x1xf32> -> vector<16x1xf32>
    %48 = vector.broadcast %47 : vector<16x1xf32> to vector<16x24xf32>
    %49 = arith.mulf %44, %48 : vector<16x24xf32>
    %cst_25 = arith.constant dense<0.000000e+00> : vector<16x32xf32>
    %50 = tpu.matmul %49, %36, %cst_25 {dimension_numbers = #tpu.dot_dimension_numbers<[1], [0], [0], [1], [0, 0, 1, 1], [], []>} : vector<16x24xf32>, vector<24x32xf32>, vector<16x32xf32> -> vector<16x32xf32>
    %51 = vector.extract_strided_slice %14 {offsets = [0, 64], sizes = [16, 32], strides = [1, 1]} : vector<16x128xf32> to vector<16x32xf32>
    %52 = vector.extract_strided_slice %15 {offsets = [0, 64], sizes = [24, 32], strides = [1, 1]} : vector<24x128xf32> to vector<24x32xf32>
    %53 = vector.extract_strided_slice %16 {offsets = [0, 64], sizes = [24, 32], strides = [1, 1]} : vector<24x128xf32> to vector<24x32xf32>
    %cst_26 = arith.constant dense<0.000000e+00> : vector<16x24xf32>
    %54 = tpu.matmul %51, %52, %cst_26 {dimension_numbers = #tpu.dot_dimension_numbers<[1], [1], [0], [0], [0, 0, 1, 0], [], []>} : vector<16x32xf32>, vector<24x32xf32>, vector<16x24xf32> -> vector<16x24xf32>
    %cst_27 = arith.constant 0.176776692 : f32
    %55 = vector.broadcast %cst_27 : f32 to vector<16x24xf32>
    %56 = arith.mulf %54, %55 : vector<16x24xf32>
    %cst_28 = arith.constant dense<0xFF800000> : vector<16xf32>
    %57 = vector.multi_reduction <maximumf>, %56, %cst_28 [1] : vector<16x24xf32> to vector<16xf32>
    %58 = vector.shape_cast %57 : vector<16xf32> to vector<16x1xf32>
    %59 = vector.broadcast %58 : vector<16x1xf32> to vector<16x24xf32>
    %60 = arith.subf %56, %59 : vector<16x24xf32>
    %61 = math.exp %60 : vector<16x24xf32>
    %cst_29 = arith.constant dense<0.000000e+00> : vector<16xf32>
    %62 = vector.multi_reduction <add>, %61, %cst_29 [1] : vector<16x24xf32> to vector<16xf32>
    %63 = vector.shape_cast %62 : vector<16xf32> to vector<16x1xf32>
    %64 = tpu.reciprocal %63 {approx = true} : vector<16x1xf32> -> vector<16x1xf32>
    %65 = vector.broadcast %64 : vector<16x1xf32> to vector<16x24xf32>
    %66 = arith.mulf %61, %65 : vector<16x24xf32>
    %cst_30 = arith.constant dense<0.000000e+00> : vector<16x32xf32>
    %67 = tpu.matmul %66, %53, %cst_30 {dimension_numbers = #tpu.dot_dimension_numbers<[1], [0], [0], [1], [0, 0, 1, 1], [], []>} : vector<16x24xf32>, vector<24x32xf32>, vector<16x32xf32> -> vector<16x32xf32>
    %68 = vector.extract_strided_slice %14 {offsets = [0, 96], sizes = [16, 32], strides = [1, 1]} : vector<16x128xf32> to vector<16x32xf32>
    %69 = vector.extract_strided_slice %15 {offsets = [0, 96], sizes = [24, 32], strides = [1, 1]} : vector<24x128xf32> to vector<24x32xf32>
    %70 = vector.extract_strided_slice %16 {offsets = [0, 96], sizes = [24, 32], strides = [1, 1]} : vector<24x128xf32> to vector<24x32xf32>
    %cst_31 = arith.constant dense<0.000000e+00> : vector<16x24xf32>
    %71 = tpu.matmul %68, %69, %cst_31 {dimension_numbers = #tpu.dot_dimension_numbers<[1], [1], [0], [0], [0, 0, 1, 0], [], []>} : vector<16x32xf32>, vector<24x32xf32>, vector<16x24xf32> -> vector<16x24xf32>
    %cst_32 = arith.constant 0.176776692 : f32
    %72 = vector.broadcast %cst_32 : f32 to vector<16x24xf32>
    %73 = arith.mulf %71, %72 : vector<16x24xf32>
    %cst_33 = arith.constant dense<0xFF800000> : vector<16xf32>
    %74 = vector.multi_reduction <maximumf>, %73, %cst_33 [1] : vector<16x24xf32> to vector<16xf32>
    %75 = vector.shape_cast %74 : vector<16xf32> to vector<16x1xf32>
    %76 = vector.broadcast %75 : vector<16x1xf32> to vector<16x24xf32>
    %77 = arith.subf %73, %76 : vector<16x24xf32>
    %78 = math.exp %77 : vector<16x24xf32>
    %cst_34 = arith.constant dense<0.000000e+00> : vector<16xf32>
    %79 = vector.multi_reduction <add>, %78, %cst_34 [1] : vector<16x24xf32> to vector<16xf32>
    %80 = vector.shape_cast %79 : vector<16xf32> to vector<16x1xf32>
    %81 = tpu.reciprocal %80 {approx = true} : vector<16x1xf32> -> vector<16x1xf32>
    %82 = vector.broadcast %81 : vector<16x1xf32> to vector<16x24xf32>
    %83 = arith.mulf %78, %82 : vector<16x24xf32>
    %cst_35 = arith.constant dense<0.000000e+00> : vector<16x32xf32>
    %84 = tpu.matmul %83, %70, %cst_35 {dimension_numbers = #tpu.dot_dimension_numbers<[1], [0], [0], [1], [0, 0, 1, 1], [], []>} : vector<16x24xf32>, vector<24x32xf32>, vector<16x32xf32> -> vector<16x32xf32>
    %85 = tpu.concatenate %33, %50, %67, %84 in 1 : vector<16x32xf32>, vector<16x32xf32>, vector<16x32xf32>, vector<16x32xf32> -> vector<16x128xf32>
    %c0_36 = arith.constant 0 : index
    %c0_37 = arith.constant 0 : index
    %86 = vector.load %arg8[%c0_36, %c0_37] : memref<128x128xf32, #tpu.memory_space<vmem>>, vector<128x128xf32>
    %cst_38 = arith.constant dense<0.000000e+00> : vector<16x128xf32>
    %87 = tpu.matmul %85, %86, %cst_38 {dimension_numbers = #tpu.dot_dimension_numbers<[1], [0], [0], [1], [0, 0, 1, 1], [], []>} : vector<16x128xf32>, vector<128x128xf32>, vector<16x128xf32> -> vector<16x128xf32>
    %88 = vector.broadcast %3 : vector<1x128xf32> to vector<16x128xf32>
    %89 = arith.addf %87, %88 : vector<16x128xf32>
    %90 = arith.addf %89, %10 : vector<16x128xf32>
    %cst_39 = arith.constant dense<0.000000e+00> : vector<16xf32>
    %91 = vector.multi_reduction <add>, %90, %cst_39 [1] : vector<16x128xf32> to vector<16xf32>
    %92 = vector.shape_cast %91 : vector<16xf32> to vector<16x1xf32>
    %cst_40 = arith.constant 1.280000e+02 : f32
    %93 = vector.broadcast %cst_40 : f32 to vector<16x1xf32>
    %94 = arith.divf %92, %93 : vector<16x1xf32>
    %95 = vector.broadcast %94 : vector<16x1xf32> to vector<16x128xf32>
    %96 = arith.subf %90, %95 : vector<16x128xf32>
    %97 = arith.mulf %96, %96 : vector<16x128xf32>
    %cst_41 = arith.constant dense<0.000000e+00> : vector<16xf32>
    %98 = vector.multi_reduction <add>, %97, %cst_41 [1] : vector<16x128xf32> to vector<16xf32>
    %99 = vector.shape_cast %98 : vector<16xf32> to vector<16x1xf32>
    %cst_42 = arith.constant 1.280000e+02 : f32
    %100 = vector.broadcast %cst_42 : f32 to vector<16x1xf32>
    %101 = arith.divf %99, %100 : vector<16x1xf32>
    %cst_43 = arith.constant 9.99999974E-6 : f32
    %102 = vector.broadcast %cst_43 : f32 to vector<16x1xf32>
    %103 = arith.addf %101, %102 : vector<16x1xf32>
    %104 = math.rsqrt %103 : vector<16x1xf32>
    %105 = vector.broadcast %104 : vector<16x1xf32> to vector<16x128xf32>
    %106 = arith.mulf %96, %105 : vector<16x128xf32>
    %107 = vector.broadcast %4 : vector<1x128xf32> to vector<16x128xf32>
    %108 = arith.mulf %106, %107 : vector<16x128xf32>
    %109 = vector.broadcast %5 : vector<1x128xf32> to vector<16x128xf32>
    %110 = arith.addf %108, %109 : vector<16x128xf32>
    %c0_44 = arith.constant 0 : index
    %c0_45 = arith.constant 0 : index
    %c0_46 = arith.constant 0 : index
    %111 = vector.load %arg10[%c0_44, %c0_45, %c0_46] : memref<1x16x128xf32, #tpu.memory_space<vmem>>, vector<1x16x128xf32>
    %112 = vector.shape_cast %111 : vector<1x16x128xf32> to vector<16x128xf32>
    %113 = vector.shape_cast %110 : vector<16x128xf32> to vector<1x16x128xf32>
    tpu.vector_store %arg10[%c0_44, %c0_45, %c0_46], %113 {strides = array<i32>} : memref<1x16x128xf32, #tpu.memory_space<vmem>>, vector<1x16x128xf32>,
    return
  }
  func.func @transform_0(%arg0: i32, %arg1: i32) -> (i32, i32, i32) {
    %c0_i32 = arith.constant 0 : i32
    %c0_i32_0 = arith.constant 0 : i32
    return %arg0, %arg1, %c0_i32 : i32, i32, i32
  }
  func.func @transform_1(%arg0: i32, %arg1: i32) -> (i32, i32, i32) {
    %c0_i32 = arith.constant 0 : i32
    %c0_i32_0 = arith.constant 0 : i32
    %c0_i32_1 = arith.constant 0 : i32
    return %arg0, %c0_i32, %c0_i32_0 : i32, i32, i32
  }
  func.func @transform_2(%arg0: i32, %arg1: i32) -> (i32, i32, i32) {
    %c0_i32 = arith.constant 0 : i32
    %c0_i32_0 = arith.constant 0 : i32
    %c0_i32_1 = arith.constant 0 : i32
    return %arg0, %c0_i32, %c0_i32_0 : i32, i32, i32
  }
  func.func @transform_3(%arg0: i32, %arg1: i32) -> (i32, i32) {
    %c0_i32 = arith.constant 0 : i32
    %c0_i32_0 = arith.constant 0 : i32
    %c0_i32_1 = arith.constant 0 : i32
    return %c0_i32, %c0_i32_0 : i32, i32
  }
  func.func @transform_4(%arg0: i32, %arg1: i32) -> (i32, i32) {
    %c0_i32 = arith.constant 0 : i32
    %c0_i32_0 = arith.constant 0 : i32
    %c0_i32_1 = arith.constant 0 : i32
    return %c0_i32, %c0_i32_0 : i32, i32
  }
  func.func @transform_5(%arg0: i32, %arg1: i32) -> (i32, i32) {
    %c0_i32 = arith.constant 0 : i32
    %c0_i32_0 = arith.constant 0 : i32
    %c0_i32_1 = arith.constant 0 : i32
    return %c0_i32, %c0_i32_0 : i32, i32
  }
  func.func @transform_6(%arg0: i32, %arg1: i32) -> (i32, i32) {
    %c0_i32 = arith.constant 0 : i32
    %c0_i32_0 = arith.constant 0 : i32
    %c0_i32_1 = arith.constant 0 : i32
    return %c0_i32, %c0_i32_0 : i32, i32
  }
  func.func @transform_7(%arg0: i32, %arg1: i32) -> (i32, i32) {
    %c0_i32 = arith.constant 0 : i32
    %c0_i32_0 = arith.constant 0 : i32
    %c0_i32_1 = arith.constant 0 : i32
    return %c0_i32, %c0_i32_0 : i32, i32
  }
  func.func @transform_8(%arg0: i32, %arg1: i32) -> (i32, i32, i32) {
    %c0_i32 = arith.constant 0 : i32
    %c0_i32_0 = arith.constant 0 : i32
    return %arg0, %arg1, %c0_i32 : i32, i32, i32
  }
}

</mosaic_0001>

<bundles_post_ra>
// kernel: tpu_custom_call.1
= control target key start
LH: loop header
LB: loop body
LE: loop exit
PB: predicated region body
PF: predicated region fallthrough
CT: control target
= control target key end

     0   :  { %s3366_s0 = inlined_call_operand.hbm [shape: f32[2,16,128], index: 0, kind: input, shape index: {}]   ;;  %s3367_s1 = inlined_call_operand.hbm [shape: f32[2,24,64], index: 1, kind: input, shape index: {}]   ;;  %s3368_s2 = inlined_call_operand.hbm [shape: f32[2,24,64], index: 2, kind: input, shape index: {}]   ;;  %s3369_s3 = inlined_call_operand.hbm [shape: f32[128,128], index: 3, kind: input, shape index: {}]   ;;  %s3370_s4 = inlined_call_operand.hbm [shape: f32[64,128], index: 4, kind: input, shape index: {}]   ;;  %s3371_s5 = inlined_call_operand.hbm [shape: f32[64,128], index: 5, kind: input, shape index: {}]   ;;  %s3372_s6 = inlined_call_operand.hbm [shape: f32[128,128], index: 6, kind: input, shape index: {}]   ;;  %s3373_s7 = inlined_call_operand.vmem [shape: f32[8,128], index: 7, kind: input, shape index: {}]   ;;  %s3374_s8 = inlined_call_operand.hbm [shape: f32[2,16,128], index: 8, kind: output, shape index: {}]  }
   0x1   :  { %3390 = sst [smem:[#allocation28_spill]] %s3367_s1 }
   0x2   :  { %3391 = sst [smem:[#allocation29_spill]] %s3369_s3 }
   0x3   :  { %3392 = sst [smem:[#allocation30_spill]] %s3370_s4 }
   0x4   :  { %3393 = sst [smem:[#allocation31_spill]] %s3371_s5 }
   0x5   :  { %3394 = sst [smem:[#allocation32_spill]] %s3372_s6 }
   0x6   :  { %13 = vsyncpa [#allocation5], 0 }
   0x7   :  { %15 = vsyncpa [#allocation5 + $0x1], 0 }
   0x8   :  { %16 = vsyncpa [#allocation8], 0 }
   0x9   :  { %18 = vsyncpa [#allocation8 + $0x1], 0 }
   0xa   :  { %19 = vsyncpa [#allocation11], 0 }
   0xb   :  { %20 = vsyncpa [#allocation14], 0 }
   0xc   :  { %21 = vsyncpa [#allocation6], 0 }
   0xd   :  { %23 = vsyncpa [#allocation6 + $0x1], 0  ;;  %s2863_s27 = smov 0   ;;  %s2865_s28 = smov 0  }
   0xe   :  { %s2867_s29 = smov 0   ;;  %s2869_s30 = smov 0  }
   0xf   :  { %s2871_s9 = smov 0   ;;  %s2873_s10 = smov 0  }
  0x10 LB: > { %3395 = sst [smem:[#allocation22_spill]] %s2779_s27  ;;  %s2894_s11 = sadd.s32 4294967295, %s2799_s10   ;;  %s2799_s10 = sphi %s2873_s10, %s29_s10   ;;  %s2795_s9 = sphi %s2871_s9, %s3435_s9   ;;  %s2791_s30 = sphi %s2869_s30, %s3434_s30   ;;  %s2787_s29 = sphi %s2867_s29, %s3430_s29   ;;  %s2783_s28 = sphi %s2865_s28, %s3433_s28   ;;  %s2779_s27 = sphi %s2863_s27, %s3432_s27  }
  0x11   : > { %3396 = sst [smem:[#allocation23_spill]] %s2787_s29  ;;  %s1985_s12 = sadd.s32 4294967294, %s2799_s10  }
  0x12   : > { %3397 = sst [smem:[#allocation24_spill]] %s2799_s10  ;;  %p63_p0 = scmp.ne.s32.totalorder %s2783_s28, %s2779_s27 }
  0x13   : > { %p3375_p1 = scmp.eq.s32.totalorder %s2894_s11, 0  ;;  %p246_p2 = scmp.eq.s32.totalorder %s2894_s11, 1 }
  0x14   : > { %p252_p3 = scmp.eq.s32.totalorder %s1985_s12, 1  ;;  %p1986_p5 = scmp.ge.s32.totalorder %s2799_s10, 1 }
  0x15   : > { %p2903_p4 = por %p3375_p1, %p63_p0  ;;  %p259_p7 = scmp.lt.s32.totalorder %s2799_s10, 3 }
  0x16   : > { %p2908_p6 = por %p252_p3, %p63_p0  ;;  %s2801_s16 = smov [#allocation10]  }
  0x17   : > { %p2913_p8 = pnand %p1986_p5, %p259_p7  ;;  %s271_s17 = sshll.u32 %s2801_s16, 4  ;;  %s272_s17 = int_to_ptr.vmem [resolvable:$true] %s271_s17 }
  0x18   : > { %s3399_s14 = scalar_select %p2908_p6, 1, 0 }
  0x19   : > { %p2370_p9 = pneg %p2913_p8  ;;  %s2802_s19 = smov [#allocation13]  }
  0x1a   : > { %3400 = sst [smem:[#allocation25_spill]] %s3399_s14  ;;  %s297_s20 = sshll.u32 %s2802_s19, 4  ;;  %s298_s20 = int_to_ptr.vmem [resolvable:$true] %s297_s20 }
  0x1b   : > { %p2922_p11 = pnand %p2370_p9, %p3375_p1  ;;  %s2530_s21 = scalar_lea.vmem %s272_s17, 2048 }
  0x1c   : > { %p2531_p13 = scmp.ne.s32.totalorder %s272_s17, %s2530_s21  ;;  %p2538_p5 = scmp.lt.s32.totalorder %s272_s17, %s272_s17 }
  0x1d   : > { %p3383_p12 = pneg %p2922_p11  ;;  %p2539_p7 = scmp.lt.s32.totalorder %s2530_s21, %s2530_s21 }
  0x1f   : > { %p2533_p0 = pnand %p2531_p13, %p3383_p12  ;;  %p2540_p10 = por %p2539_p7, %p2538_p5 }
  0x21   : > { %p2534_p3 = pneg %p2533_p0 }
  0x23   : > { %p2541_p9 = pnand %p2540_p10, %p2534_p3 }
  0x25   : > { %2544 = shalt.err (!%p2541_p9)
}
  0x26   : > { %s3376_s22 = smov 128   ;;  %s3378_s23 = smov 8  }
  0x27   : > { %s3403_s3 = sld [smem:[#allocation29_spill]]  ;;  %s2556_s26 = scalar_lea.vmem %s298_s20, 1024 }
  0x28   : > { %p2557_p13 = scmp.ne.s32.totalorder %s298_s20, %s2556_s26  ;;  %p2564_p10 = scmp.lt.s32.totalorder %s298_s20, %s298_s20 }
  0x29   : > { %p2565_p3 = scmp.lt.s32.totalorder %s2556_s26, %s2556_s26 }
  0x2a   : > { %p2559_p0 = pnand %p2557_p13, %p3383_p12 }
  0x2b   : > { %p2566_p7 = por %p2565_p3, %p2564_p10 }
  0x2c   : > { %p2560_p5 = pneg %p2559_p0 }
  0x2d   : > { %2373 = dma.hbm_to_vmem [thread:$0]  (!%p2922_p11), %s3403_s3, 2048, %s272_s17, [#allocation11], %s3376_s22, %s3376_s22, %s3378_s23  }
  0x2e   : > { %p2567_p9 = pnand %p2566_p7, %p2560_p5 }
  0x30   : > { %2570 = shalt.err (!%p2567_p9)
}
  0x31   : > { %s3404_s5 = sld [smem:[#allocation31_spill]]  ;;  %s41_s17 = sadd.s32 1, %s2795_s9 }
  0x32   : > { %s50_s19 = sadd.s32 1, %s2787_s29  ;;  %p43_p13 = scmp.ge.s32.totalorder %s41_s17, 2 }
  0x33   : > { %p57_p0 = scmp.ne.s32.totalorder %s2787_s29, %s2783_s28  ;;  %p58_p5 = scmp.eq.s32.totalorder %s2799_s10, 0 }
  0x34   : > { %p2401_p10 = scmp.lt.s32.totalorder %s2799_s10, 2  ;;  %s3437_s17 = smov (%p43_p13, %s41_s17), 0 }
  0x35   : > { %3405 = sst [smem:[#allocation26_spill]] %s3437_s17  ;;  %p59_p3 = por %p58_p5, %p57_p0 }
  0x36   : > { %p2960_p7 = por %p246_p2, %p57_p0  ;;  %s45_s24 = ssub.s32 %s2795_s9, %s3437_s17 }
  0x37   : > { %2379 = dma.hbm_to_vmem [thread:$0]  (!%p2922_p11), %s3404_s5, 1024, %s298_s20, [#allocation14], %s3376_s22, %s3376_s22, %s3378_s23  }
  0x38   : > { %s2967_s20 = sand.u32 1, %s2787_s29   ;;  %p48_p9 = scmp.eq.s32.totalorder %s45_s24, 0 }
  0x39   : > { %p2969_p1 = pnand %p2401_p10, %p59_p3  ;;  %s350_s26 = sand.u32 1, %s2799_s10  }
  0x3a   : > { %s3384_s12 = smul.u32 24, %s2967_s20  ;;  %s3409_s1 = sld [smem:[#allocation28_spill]] }
  0x3b   : > { %s2976_s16 = scalar_select %p48_p9, %s2787_s29, %s50_s19  }
  0x3c   : > { %s3385_s22 = smul.u32 384, %s2795_s9  ;;  %s354_s23 = scalar_lea.vmem [#allocation7], %s3384_s12 }
  0x3d   : > { %3408 = sst [smem:[#allocation27_spill]] %s2976_s16  ;;  %s361_s3 = sshll.u32 %s354_s23, 4  ;;  %s362_s3 = int_to_ptr.vmem [resolvable:$true] %s361_s3 }
  0x3e   : > { %s2986_s24 = scalar_lea.sflag [#allocation8], %s350_s26  ;;  %p3386_p2 = pneg %p2969_p1 }
  0x3f   : > { %s2584_s27 = scalar_lea.vmem %s362_s3, 384  ;;  %s2805_s19 = smov [#allocation7]  }
  0x40   : > { %s360_s14 = scalar_lea.hbm %s3409_s1, %s3385_s22  ;;  %p2585_p13 = scmp.ne.s32.totalorder %s362_s3, %s2584_s27 }
  0x41   : > { %s2589_s16 = sshll.u32 %s2805_s19, 4  ;;  %s2590_s16 = int_to_ptr.vmem [resolvable:$false] %s2589_s16 }
  0x42   : > { %p2587_p0 = pnand %p2585_p13, %p3386_p2  ;;  %s2591_s23 = scalar_lea.vmem %s2590_s16, 768 }
  0x43   : > { %p2592_p10 = scmp.lt.s32.totalorder %s362_s3, %s2590_s16  ;;  %p2593_p3 = scmp.lt.s32.totalorder %s2591_s23, %s2584_s27 }
  0x44   : > { %p2588_p5 = pneg %p2587_p0 }
  0x45   : > { %p2594_p9 = por %p2593_p3, %p2592_p10 }
  0x47   : > { %p2595_p12 = pnand %p2594_p9, %p2588_p5 }
  0x49   : > { %2598 = shalt.err (!%p2595_p12)
}
  0x4a   : > { %s3410_s5 = smov 8   ;;  %s3411_s17 = smov 128  }
  0x4b   : > { %2389 = dma.hbm_to_vmem [thread:$0]  (!%p2969_p1), %s360_s14, 384, %s362_s3, %s2986_s24, %s3411_s17, %s3411_s17, %s3410_s5  }
  0x4c   : > { %s2806_s26 = smov [#allocation12]   ;;  %s2807_s22 = smov [#allocation15]  }
  0x4d   : > { %s284_s12 = sshll.u32 %s2806_s26, 4  ;;  %s310_s19 = sshll.u32 %s2807_s22, 4  ;;  %s285_s12 = int_to_ptr.vmem [resolvable:$true] %s284_s12  ;;  %s311_s19 = int_to_ptr.vmem [resolvable:$true] %s310_s19 }
  0x4e   : > { %s2610_s1 = scalar_lea.vmem %s285_s12, 1024  ;;  %p3412_p0 = pneg %p2922_p11 }
  0x4f   : > { %p2611_p13 = scmp.ne.s32.totalorder %s285_s12, %s2610_s1  ;;  %p2618_p12 = scmp.lt.s32.totalorder %s285_s12, %s285_s12 }
  0x50   : > { %p2619_p3 = scmp.lt.s32.totalorder %s2610_s1, %s2610_s1 }
  0x51   : > { %p2613_p10 = pnand %p2611_p13, %p3412_p0 }
  0x52   : > { %p2620_p9 = por %p2619_p3, %p2618_p12 }
  0x53   : > { %p2614_p5 = pneg %p2613_p10 }
  0x55   : > { %p2621_p2 = pnand %p2620_p9, %p2614_p5 }
  0x57   : > { %2624 = shalt.err (!%p2621_p2)
}
  0x58   : > { %s3413_s4 = sld [smem:[#allocation30_spill]]  ;;  %s2636_s14 = scalar_lea.vmem %s311_s19, 2048 }
  0x59   : > { %p2637_p6 = scmp.ne.s32.totalorder %s311_s19, %s2636_s14  ;;  %p3414_p13 = pmov %p3412_p0 }
  0x5a   : > { %p2644_p12 = scmp.lt.s32.totalorder %s311_s19, %s311_s19  ;;  %p2645_p5 = scmp.lt.s32.totalorder %s2636_s14, %s2636_s14 }
  0x5b   : > { %p2639_p0 = pnand %p2637_p6, %p3414_p13 }
  0x5c   : > { %p2646_p2 = por %p2645_p5, %p2644_p12 }
  0x5d   : > { %p2640_p10 = pneg %p2639_p0 }
  0x5e   : > { %2376 = dma.hbm_to_vmem [thread:$0]  (!%p2922_p11), %s3413_s4, 1024, %s285_s12, [#allocation11], %s3411_s17, %s3411_s17, %s3410_s5  }
  0x5f   : > { %p2647_p3 = pnand %p2646_p2, %p2640_p10 }
  0x61   : > { %2650 = shalt.err (!%p2647_p3)
}
  0x62   : > { %s3415_s6 = sld [smem:[#allocation32_spill]]  ;;  %s1992_s12 = sshll.u32 %s2967_s20, 4 }
  0x63   : > { %s2049_s16 = sshll.u32 %s2795_s9, 8  ;;  %s331_s27 = scalar_lea.vmem [#allocation4], %s1992_s12 }
  0x64   : > { %s339_s3 = scalar_lea.hbm %s3366_s0, %s2049_s16  ;;  %s340_s18 = sshll.u32 %s331_s27, 4  ;;  %s341_s18 = int_to_ptr.vmem [resolvable:$true] %s340_s18 }
  0x65   : > { %s3416_s14 = smul.u32 384, %s2795_s9  ;;  %s328_s22 = scalar_lea.sflag [#allocation5], %s2967_s20 }
  0x66   : > { %s2664_s10 = scalar_lea.vmem %s341_s18, 256 }
  0x67   : > { %s3031_s1 = scalar_lea.hbm %s3368_s2, %s3416_s14  ;;  %p2665_p6 = scmp.ne.s32.totalorder %s341_s18, %s2664_s10 }
  0x68   : > { %2382 = dma.hbm_to_vmem [thread:$0]  (!%p2922_p11), %s3415_s6, 2048, %s311_s19, [#allocation14], %s3411_s17, %s3411_s17, %s3410_s5  }
  0x69   : > { %p3417_p11 = pneg %p2969_p1  ;;  %s2808_s19 = smov [#allocation4]  }
  0x6a   : > { %s2669_s6 = sshll.u32 %s2808_s19, 4  ;;  %s2670_s6 = int_to_ptr.vmem [resolvable:$false] %s2669_s6 }
  0x6b   : > { %p2667_p9 = pnand %p2665_p6, %p3417_p11  ;;  %s2671_s16 = scalar_lea.vmem %s2670_s6, 512 }
  0x6c   : > { %p2672_p0 = scmp.lt.s32.totalorder %s341_s18, %s2670_s6  ;;  %p2673_p10 = scmp.lt.s32.totalorder %s2671_s16, %s2664_s10 }
  0x6d   : > { %p2668_p13 = pneg %p2667_p9 }
  0x6e   : > { %p2674_p12 = por %p2673_p10, %p2672_p0 }
  0x70   : > { %p2675_p5 = pnand %p2674_p12, %p2668_p13 }
  0x72   : > { %2678 = shalt.err (!%p2675_p5)
}
  0x73   : > { %2386 = dma.hbm_to_vmem [thread:$0]  (!%p2969_p1), %s339_s3, 256, %s341_s18, %s328_s22, %s3411_s17, %s3411_s17, %s3410_s5  }
  0x74   : > { %s3418_s4 = smul.u32 24, %s2967_s20  ;;  %p3419_p3 = pmov %p3417_p11 }
  0x75   : > { %s2809_s6 = smov [#allocation9]  }
  0x76   : > { %s375_s29 = scalar_lea.vmem [#allocation9], %s3418_s4  ;;  %s2697_s10 = sshll.u32 %s2809_s6, 4  ;;  %s2698_s10 = int_to_ptr.vmem [resolvable:$false] %s2697_s10 }
  0x77   : > { %s382_s12 = sshll.u32 %s375_s29, 4  ;;  %s2699_s26 = scalar_lea.vmem %s2698_s10, 768  ;;  %s383_s12 = int_to_ptr.vmem [resolvable:$true] %s382_s12 }
  0x78   : > { %s2692_s23 = scalar_lea.vmem %s383_s12, 384  ;;  %p2700_p9 = scmp.lt.s32.totalorder %s383_s12, %s2698_s10 }
  0x79   : > { %p2693_p2 = scmp.ne.s32.totalorder %s383_s12, %s2692_s23  ;;  %p2701_p13 = scmp.lt.s32.totalorder %s2699_s26, %s2692_s23 }
  0x7b   : > { %p2695_p6 = pnand %p2693_p2, %p3419_p3  ;;  %p2702_p0 = por %p2701_p13, %p2700_p9 }
  0x7d   : > { %p2696_p11 = pneg %p2695_p6 }
  0x7f   : > { %p2703_p10 = pnand %p2702_p0, %p2696_p11 }
  0x81   : > { %2706 = shalt.err (!%p2703_p10)
}
  0x82   : > { %2392 = dma.hbm_to_vmem [thread:$0]  (!%p2969_p1), %s3031_s1, 384, %s383_s12, %s2986_s24, %s3411_s17, %s3411_s17, %s3410_s5  }
  0x83   : > { %394 = sbr.rel (%p2913_p8) target bundleno = 2856 (0xb28), region = 52  ;;  %s3057_s20 = sand.u32 (!%p2913_p8), 1, %s2783_s28  }
  0x84   : > { %s1998_s3 = sshll.u32 (!%p2913_p8), %s3057_s20, 4  ;;  %s397_s27 = scalar_lea.sflag (!%p2913_p8), [#allocation5], %s3057_s20 }
  0x85   : > { %s3063_s25 = scalar_lea.vmem (!%p2913_p8), [#allocation4], %s1998_s3 }
  0x88   : > { %2758 = dma.done.wait (%p2903_p4), %s397_s27, 256  }
  0x89   : > { %2760 = vsyncadd (%p2903_p4), %s397_s27, 4294967040  ;;  %s405_s15 = sand.u32 1, %s2894_s11   ;;  %s2345_s24 = smul.u32 24, %s3057_s20 }
  0x8a   : > { %s406_s5 = scalar_lea.sflag [#allocation8], %s405_s15 }
  0x8b   : > { %s3071_s17 = scalar_lea.vmem [#allocation7], %s2345_s24 }
  0x8c   : > { %2762 = dma.done.wait (%p2903_p4), %s406_s5, 768  }
  0x8d   : > { %2764 = vsyncadd (%p2903_p4), %s406_s5, 4294966528  ;;  %s3077_s18 = scalar_lea.vmem [#allocation9], %s2345_s24  ;;  %p3420_p1 = scmp.eq.s32.totalorder %s2894_s11, 0 }
  0x8f   : > { %2766 = dma.done.wait (%p3420_p1), [#allocation11], 3072   ;;  %p3421_p8 = pmov %p3420_p1 }
  0x90   : > { %p3422_p12 = pmov %p3420_p1 }
  0x91   : > { %2768 = vsyncadd (%p3421_p8), [#allocation11], 4294964224 }
  0x92   : > { %2770 = dma.done.wait (%p3422_p12), [#allocation14], 3072   ;;  %p3423_p5 = pmov %p3420_p1 }
  0x93   : > { %v2810_v0 = vmov 0.0   ;;  %vm2811_vm0 = vmmov 0   ;;  %v499_v1 = vld [vmem:[#allocation12 + $0x38] sm:$0xff]  ;;  %v498_v3 = vld [vmem:[#allocation12 + $0x30] sm:$0xff]  ;;  %v497_v5 = vld [vmem:[#allocation12 + $0x28] sm:$0xff]  ;;  %vm504_vm1 = vcmask 523264  }
  0x94   : > { %2772 = vsyncadd (%p3423_p5), [#allocation14], 4294964224  ;;  %2149 = vmatprep.subr.mxu1 %v2810_v0  ;;  %2165 = vmatprep.mubr.msk.f32.mxu1 %vm2811_vm0, %v2810_v0  ;;  %v721_v2 = vld [vmem:[#allocation10 + $0x78] sm:$0xff]  ;;  %v720_v4 = vld [vmem:[#allocation10 + $0x70] sm:$0xff]  ;;  %s2812_s14 = smov 96   ;;  %vm807_vm2 = vcmask 261120  }
  0x95   : > { %2150 = vmatpush3.msra.mxu1 %v499_v1  ;;  %2199 = vmatprep.subr.mxu0 %v721_v2  ;;  %v719_v6 = vld [vmem:[#allocation10 + $0x68] sm:$0xff]  ;;  %v496_v7 = vld [vmem:[#allocation12 + $0x20] sm:$0xff]  ;;  %v495_v9 = vld [vmem:[#allocation12 + $0x18] sm:$0xff]  ;;  %s2813_s1 = smov 64   ;;  %vm900_vm3 = vcmask 195584   ;;  %s2814_s29 = smov 32  }
  0x96   : > { %2151 = vmatprep.subr.mxu1 %v2810_v0  ;;  %2200 = vmatpush3.msra.mxu0 %v721_v2  ;;  %v718_v8 = vld [vmem:[#allocation10 + $0x60] sm:$0xff]  ;;  %v717_v10 = vld [vmem:[#allocation10 + $0x58] sm:$0xff]  ;;  %v494_v11 = vld [vmem:[#allocation12 + $0x10] sm:$0xff]  ;;  %vm1663_vm4 = vcmask 785408   ;;  %s476_s15 = scalar_lea.vmem [#allocation16], %s1998_s3  ;;  %s1801_s11 = scalar_lea.sflag [#allocation6], %s3057_s20 }
  0x97   : > { %2152 = vmatpush3.msra.mxu1 %v498_v3  ;;  %2201 = vmatprep.subr.mxu0 %v720_v4  ;;  %v716_v12 = vld [vmem:[#allocation10 + $0x50] sm:$0xff]  ;;  %v493_v13 = vld [vmem:[#allocation12 + $0x8] sm:$0xff]  ;;  %v492_v15 = vld [vmem:[#allocation12] sm:$0xff]  ;;  %s1816_s24 = sshll.u32 %s476_s15, 4  ;;  %s3318_s24 = int_to_ptr.vmem [resolvable:$true] %s1816_s24 }
  0x98   : > { %2153 = vmatprep.subr.mxu1 %v2810_v0  ;;  %2202 = vmatpush3.msra.mxu0 %v720_v4  ;;  %v715_v14 = vld [vmem:[#allocation10 + $0x48] sm:$0xff]  ;;  %v714_v16 = vld [vmem:[#allocation10 + $0x40] sm:$0xff]  ;;  %v713_v18 = vld [vmem:[#allocation10 + $0x38] sm:$0xff]  ;;  %s2707_s13 = scalar_lea.vmem %s3318_s24, 256 }
  0x99   : > { %2154 = vmatpush3.msra.mxu1 %v497_v5  ;;  %2203 = vmatprep.subr.mxu0 %v719_v6  ;;  %v489_v17 = vld [vmem:[%s3071_s17] sm:$0xff]  ;;  %v712_v20 = vld [vmem:[#allocation10 + $0x30] sm:$0xff]  ;;  %v490_v21 = vld [vmem:[%s3071_s17 + $0x8] sm:$0xff]  ;;  %p2708_p4 = scmp.ne.s32.totalorder %s3318_s24, %s2707_s13 }
  0x9a   : > { %2155 = vmatprep.subr.mxu1 %v2810_v0  ;;  %2204 = vmatpush3.msra.mxu0 %v719_v6  ;;  %v3099_v19 = vld [vmem:[%s3063_s25] sm:$0xff]  ;;  %v711_v22 = vld [vmem:[#allocation10 + $0x28] sm:$0xff]  ;;  %v607_v23 = vld [vmem:[#allocation13 + $0x38] sm:$0xff] }
  0x9b   : > { %2156 = vmatpush3.msra.mxu1 %v496_v7  ;;  %2205 = vmatprep.subr.mxu0 %v718_v8  ;;  %v710_v24 = vld [vmem:[#allocation10 + $0x20] sm:$0xff]  ;;  %v491_v25 = vld [vmem:[%s3071_s17 + $0x10] sm:$0xff]  ;;  %v709_v26 = vld [vmem:[#allocation10 + $0x18] sm:$0xff]  ;;  %p2709_p2 = pnand %p2708_p4, %p2960_p7 }
  0x9c   : > { %2157 = vmatprep.subr.mxu1 %v2810_v0  ;;  %2206 = vmatpush3.msra.mxu0 %v718_v8  ;;  %v606_v27 = vld [vmem:[#allocation13 + $0x30] sm:$0xff]  ;;  %v605_v29 = vld [vmem:[#allocation13 + $0x28] sm:$0xff]  ;;  %v604_v31 = vld [vmem:[#allocation13 + $0x20] sm:$0xff] }
  0x9d   : > { %2158 = vmatpush3.msra.mxu1 %v495_v9  ;;  %2207 = vmatprep.subr.mxu0 %v717_v10  ;;  %v708_v28 = vld [vmem:[#allocation10 + $0x10] sm:$0xff]  ;;  %v707_v30 = vld [vmem:[#allocation10 + $0x8] sm:$0xff]  ;;  %v706_v32 = vld [vmem:[#allocation10] sm:$0xff]  ;;  %p2710_p3 = pneg %p2709_p2 }
  0x9e   : > { %2159 = vmatprep.subr.mxu1 %v2810_v0  ;;  %2208 = vmatpush3.msra.mxu0 %v717_v10  ;;  %v603_v33 = vld [vmem:[#allocation13 + $0x18] sm:$0xff]  ;;  %v602_v35 = vld [vmem:[#allocation13 + $0x10] sm:$0xff]  ;;  %v601_v36 = vld [vmem:[#allocation13 + $0x8] sm:$0xff] }
  0x9f   : > { %2160 = vmatpush3.msra.mxu1 %v494_v11  ;;  %2209 = vmatprep.subr.mxu0 %v716_v12  ;;  %v3116_v34 = vld [vmem:[%s3063_s25 + $0x8] sm:$0xff]  ;;  %v600_v37 = vld [vmem:[#allocation13] sm:$0xff]  ;;  %v597_v38 = vld [vmem:[%s3077_s18] sm:$0xff]  ;;  %s2050_s25 = sshll.u32 %s2791_s30, 8  ;;  %s2815_s30 = smov [#allocation16]  }
  0xa0   : > { %2161 = vmatprep.subr.mxu1 %v2810_v0  ;;  %2210 = vmatpush3.msra.mxu0 %v716_v12  ;;  %v598_v39 = vld [vmem:[%s3077_s18 + $0x8] sm:$0xff]  ;;  %v599_v40 = vld [vmem:[%s3077_s18 + $0x10] sm:$0xff]  ;;  %s3316_s18 = scalar_lea.hbm %s3374_s8, %s2050_s25  ;;  %s2711_s3 = sshll.u32 %s2815_s30, 4  ;;  %s2712_s3 = int_to_ptr.vmem [resolvable:$false] %s2711_s3 }
  0xa1   : > { %2162 = vmatpush3.msra.mxu1 %v493_v13  ;;  %2211 = vmatprep.subr.mxu0 %v715_v14  ;;  %v2004_v43 = vld [vmem:[%s3373_s7 + $0x1] ss:$0 sm:$0xff]  ;;  %v2012_v52 = vld [vmem:[%s3373_s7] ss:$0 sm:$0xff]  ;;  %v2008_v59 = vld [vmem:[%s3373_s7 + $0x2] ss:$0 sm:$0xff]  ;;  %p2714_p6 = scmp.lt.s32.totalorder %s3318_s24, %s2712_s3 }
  0xa2   : > { %2163 = vmatprep.subr.mxu1 %v2810_v0  ;;  %2212 = vmatpush3.msra.mxu0 %v715_v14 }
  0xa3   : > { %2164 = vmatpush3.msra.mxu1 %v492_v15  ;;  %2213 = vmatprep.subr.mxu0 %v714_v16 }
  0xa4   : > { %2166 = vmatmul.mubr.msk.f32.vlgmr.msra.gmra.mxu1 %vm504_vm1, %v489_v17  ;;  %2214 = vmatpush3.msra.mxu0 %v714_v16 }
  0xa5   : > { %2215 = vmatprep.subr.mxu0 %v713_v18  ;;  %2168 = vmatprep.mubr.msk.f32.mxu1 %vm2811_vm0, %v2810_v0 }
  0xa6   : > { %2216 = vmatpush3.msra.mxu0 %v713_v18  ;;  %2231 = vmatprep.mubr.f32.mxu0 %v3099_v19 }
  0xa7   : > { %2217 = vmatprep.subr.mxu0 %v712_v20  ;;  %2174 = vmatprep.subr.mxu1 %v2810_v0 }
  0xa8   : > { %2169 = vmatmul.mubr.msk.f32.gmra.mxu1 %vm504_vm1, %v490_v21  ;;  %2218 = vmatpush3.msra.mxu0 %v712_v20 }
  0xa9   : > { %2219 = vmatprep.subr.mxu0 %v711_v22  ;;  %2171 = vmatprep.mubr.msk.f32.mxu1 %vm2811_vm0, %v2810_v0 }
  0xaa   : > { %2220 = vmatpush3.msra.mxu0 %v711_v22  ;;  %2175 = vmatpush3.msra.mxu1 %v607_v23 }
  0xab   : > { %2221 = vmatprep.subr.mxu0 %v710_v24  ;;  %2176 = vmatprep.subr.mxu1 %v2810_v0 }
  0xac   : > { %2172 = vmatmul.mubr.msk.f32.gmra.mxu1 %vm504_vm1, %v491_v25  ;;  %2222 = vmatpush3.msra.mxu0 %v710_v24 }
  0xad   : > { %2223 = vmatprep.subr.mxu0 %v709_v26  ;;  %2177 = vmatpush3.msra.mxu1 %v606_v27 }
  0xae   : > { %2224 = vmatpush3.msra.mxu0 %v709_v26  ;;  %2178 = vmatprep.subr.mxu1 %v2810_v0 }
  0xaf   : > { %2225 = vmatprep.subr.mxu0 %v708_v28  ;;  %2179 = vmatpush3.msra.mxu1 %v605_v29 }
  0xb0   : > { %2226 = vmatpush3.msra.mxu0 %v708_v28  ;;  %2180 = vmatprep.subr.mxu1 %v2810_v0 }
  0xb1   : > { %2227 = vmatprep.subr.mxu0 %v707_v30  ;;  %2181 = vmatpush3.msra.mxu1 %v604_v31 }
  0xb2   : > { %2228 = vmatpush3.msra.mxu0 %v707_v30  ;;  %2182 = vmatprep.subr.mxu1 %v2810_v0 }
  0xb3   : > { %2229 = vmatprep.subr.mxu0 %v706_v32  ;;  %2183 = vmatpush3.msra.mxu1 %v603_v33 }
  0xb4   : > { %2230 = vmatpush3.msra.mxu0 %v706_v32  ;;  %2184 = vmatprep.subr.mxu1 %v2810_v0 }
  0xb5   : > { %2232 = vmatmul.mubr.f32.vlgmr.msra.gmra.mxu0 %v3116_v34  ;;  %2185 = vmatpush3.msra.mxu1 %v602_v35 }
  0xb6   : > { %2186 = vmatprep.subr.mxu1 %v2810_v0  ;;  %2190 = vmatprep.mubr.msk.f32.mxu1 %vm2811_vm0, %v2810_v0 }
  0xb7   : > { %2187 = vmatpush3.msra.mxu1 %v601_v36 }
  0xb8   : > { %2188 = vmatprep.subr.mxu1 %v2810_v0 }
  0xb9   : > { %2189 = vmatpush3.msra.mxu1 %v600_v37 }
  0xba   : > { %2191 = vmatmul.mubr.msk.f32.vlgmr.msra.gmra.mxu1 %vm504_vm1, %v597_v38 }
  0xbb   : > { %2193 = vmatprep.mubr.msk.f32.mxu1 %vm2811_vm0, %v2810_v0 }
  0xbe   : > { %2194 = vmatmul.mubr.msk.f32.gmra.mxu1 %vm504_vm1, %v598_v39 }
  0xbf   : > { %2196 = vmatprep.mubr.msk.f32.mxu1 %vm2811_vm0, %v2810_v0 }
  0xc2   : > { %2197 = vmatmul.mubr.msk.f32.gmra.mxu1 %vm504_vm1, %v599_v40 }
 0x164   : > { %v580_v41 = vpop.f32.mrf.mxu1 }
 0x165   : > { %v3152_v50 = vadd.f32 %v2004_v43, %v580_v41 }
 0x166   : > { %v2167_v42 = vpop.f32.mrf.mxu1 }
 0x168   : > { %v585_v44 = vpop.f32.mrf.mxu1 }
 0x169   : > { %v3138_v45 = vadd.f32 %v2004_v43, %v585_v44 }
 0x16a   : > { %v2170_v46 = vpop.f32.mrf.mxu1 }
 0x16b   : > { %1010 = vrot.lane.b32.xlu1 %v3138_v45, %s2812_s14 }
 0x16c   : > { %v590_v47 = vpop.f32.mrf.mxu1 }
 0x16d   : > { %v3142_v48 = vadd.f32 %v2004_v43, %v590_v47 }
 0x16e   : > { %v2173_v49 = vpop.f32.mrf.mxu1 }
 0x16f   : > { %2234 = vmatprep.subr.msk.mxu1 %vm807_vm2, %v3142_v48  ;;  %1224 = vrot.lane.b32.xlu1 %v3142_v48, %s2813_s1 }
 0x170   : > { %2235 = vmatpush3.xpose.msk.msra.mxu1 %vm807_vm2, %v3142_v48 }
 0x171   : > { %2236 = vmatprep.subr.msk.mxu1 %vm807_vm2, %v3138_v45 }
 0x174   : > { %2237 = vmatpush3.xpose.msk.msra.mxu1 %vm807_vm2, %v3138_v45 }
 0x175   : > { %v2233_v51 = vpop.f32.mrf.mxu0  ;;  %2238 = vmatprep.subr.msk.mxu1 %vm807_vm2, %v3152_v50 }
 0x176   : > { %v3165_v55 = vadd.f32 %v2233_v51, %v2012_v52 }
 0x177   : > { %v792_v53 = vpop.f32.mrf.mxu0 }
 0x178   : > { %v3161_v54 = vadd.f32 %v2012_v52, %v792_v53  ;;  %2239 = vmatpush3.xpose.msk.msra.mxu1 %vm807_vm2, %v3152_v50 }
 0x17a   : > { %2240 = vmatprep.mubr.msk.f32.mxu1 %vm807_vm2, %v3161_v54  ;;  %v687_v56 = vpop.f32.mrf.mxu1 }
 0x17b   : > { %2241 = vmatmul.mubr.msk.f32.vlgmr.msra.gmra.mxu1 %vm807_vm2, %v3165_v55  ;;  %v3178_v1 = vadd.f32 %v2008_v59, %v687_v56 }
 0x17c   : > { %v2192_v57 = vpop.f32.mrf.mxu1 }
 0x17e   : > { %v692_v58 = vpop.f32.mrf.mxu1 }
 0x17f   : > { %v3174_v62 = vadd.f32 %v2008_v59, %v692_v58 }
 0x180   : > { %v2195_v60 = vpop.f32.mrf.mxu1 }
 0x182   : > { %v697_v61 = vpop.f32.mrf.mxu1 }
 0x183   : > { %v3176_v63 = vadd.f32 %v2008_v59, %v697_v61 }
 0x184   : > { %v2198_v0 = vpop.f32.mrf.mxu1 }
 0x185   : > { %2243 = vmatprep.subr.mxu1 %v3176_v63 }
 0x186   : > { %2244 = vmatpush3.msra.mxu1 %v3176_v63 }
 0x187   : > { %2245 = vmatprep.subr.mxu1 %v3174_v62 }
 0x188   : > { %2246 = vmatpush3.msra.mxu1 %v3174_v62 }
 0x189   : > { %2247 = vmatprep.subr.mxu1 %v3178_v1 }
 0x18a   : > { %2248 = vmatpush3.msra.mxu1 %v3178_v1 }
 0x1dd   : > { %v3186_v2 = vpop.permute.xlu1 %1010 }
 0x1e1   : > { %v1225_v3 = vpop.permute.xlu1 %1224 }
 0x1e2   : > { %2270 = vmatprep.subr.msk.mxu0 %vm807_vm2, %v1225_v3 }
 0x1e3   : > { %2271 = vmatpush3.xpose.msk.msra.mxu0 %vm807_vm2, %v1225_v3 }
 0x23b   : > { %v2242_v4 = vpop.f32.mrf.mxu1 }
 0x23c   : > { %v899_v7 = vmul.f32 0.17677669, %v2242_v4 }
 0x23d   : > { %v889_v5 = vpop.f32.mrf.mxu1 }
 0x23e   : > { %v898_v6 = vmul.f32 0.17677669, %v889_v5  ;;  %v904_v9 = vsel %vm900_vm3, %v899_v7, -inf }
 0x240   : > { %v901_v8 = vsel %vm900_vm3, %v898_v6, -inf }
 0x241   : > { %902 = vmax.xlane.f32.xlu0 %v901_v8 }
 0x245   : > { %905 = vmax.xlane.f32.xlu0 %v904_v9 }
 0x25b   : > { %1012 = vrot.lane.b32.xlu0 %v3142_v48, %s2812_s14 }
 0x25f   : > { %1222 = vrot.lane.b32.xlu0 %v3138_v45, %s2813_s1 }
 0x263   : > { %1006 = vrot.lane.b32.xlu0 %v3165_v55, %s2812_s14 }
 0x267   : > { %1216 = vrot.lane.b32.xlu0 %v3161_v54, %s2813_s1 }
 0x2ca   : > { %v903_v10 = vpop.xlane.xlu0 %902 }
 0x2cb   : > { %v907_v11 = vsub.f32 %v898_v6, %v903_v10 }
 0x2cd   : > { %v909_v14 = vmul.f32 1.442695, %v907_v11 }
 0x2ce   : > { %v906_v12 = vpop.xlane.xlu0 %905 }
 0x2cf   : > { %v908_v13 = vsub.f32 %v899_v7, %v906_v12 }
 0x2d1   : > { %v911_v15 = vmul.f32 1.442695, %v908_v13 }
 0x2d2   : > { %v1013_v16 = vpop.permute.xlu0 %1012 }
 0x2d3   : > { %2483 = vpow2.f32 %v911_v15  ;;  %2252 = vmatprep.subr.msk.mxu1 %vm807_vm2, %v1013_v16 }
 0x2d4   : > { %2485 = vpow2.f32 %v909_v14 }
 0x2d6   : > { %v1223_v17 = vpop.permute.xlu0 %1222 }
 0x2d7   : > { %2272 = vmatprep.subr.msk.mxu0 %vm807_vm2, %v1223_v17 }
 0x2d8   : > { %2273 = vmatpush3.xpose.msk.msra.mxu0 %vm807_vm2, %v1223_v17 }
 0x2da   : > { %v1007_v18 = vpop.permute.xlu0 %1006 }
 0x2de   : > { %v1217_v20 = vpop.permute.xlu0 %1216 }
 0x2df   : > { %2276 = vmatprep.mubr.msk.f32.mxu0 %vm807_vm2, %v1217_v20 }
 0x2e0   : > { %v2484_v21 = vpop.eup %2483 }
 0x2e1   : > { %v916_v22 = vsel %vm900_vm3, %v2484_v21, 0.0  ;;  %v2486_v23 = vpop.eup %2485 }
 0x2e2   : > { %917 = vadd.xlane.f32.xlu1 %v916_v22  ;;  %v913_v24 = vsel %vm900_vm3, %v2486_v23, 0.0 }
 0x2e6   : > { %914 = vadd.xlane.f32.xlu1 %v913_v24 }
 0x2f7   : > { %1008 = vrot.lane.b32.xlu1 %v3152_v50, %s2812_s14 }
 0x2fb   : > { %1004 = vrot.lane.b32.xlu1 %v3161_v54, %s2812_s14 }
 0x2ff   : > { %1220 = vrot.lane.b32.xlu1 %v3152_v50, %s2813_s1 }
 0x303   : > { %1218 = vrot.lane.b32.xlu1 %v3165_v55, %s2813_s1 }
 0x36b   : > { %v918_v25 = vpop.xlane.xlu1 %917 }
 0x36c   : > { %2487 = vrcp.f32 %v918_v25 }
 0x36f   : > { %v915_v26 = vpop.xlane.xlu1 %914 }
 0x370   : > { %2489 = vrcp.f32 %v915_v26 }
 0x373   : > { %v1009_v27 = vpop.permute.xlu1 %1008 }
 0x377   : > { %v1005_v28 = vpop.permute.xlu1 %1004 }
 0x379   : > { %v2488_v30 = vpop.eup %2487 }
 0x37a   : > { %v922_v35 = vmul.f32 %v2488_v30, %v2484_v21 }
 0x37b   : > { %v1221_v29 = vpop.permute.xlu1 %1220 }
 0x37c   : > { %2274 = vmatprep.subr.msk.mxu0 %vm807_vm2, %v1221_v29 }
 0x37d   : > { %v2490_v31 = vpop.eup %2489  ;;  %2275 = vmatpush3.xpose.msk.msra.mxu0 %vm807_vm2, %v1221_v29 }
 0x37e   : > { %v921_v32 = vmul.f32 %v2490_v31, %v2486_v23 }
 0x37f   : > { %v1219_v33 = vpop.permute.xlu1 %1218 }
 0x380   : > { %2249 = vmatprep.mubr.msk.f32.mxu1 %vm900_vm3, %v921_v32  ;;  %2277 = vmatmul.mubr.msk.f32.vlgmr.msra.gmra.mxu0 %vm807_vm2, %v1219_v33 }
 0x381   : > { %2250 = vmatmul.mubr.msk.f32.vlgmr.msra.gmra.mxu1 %vm900_vm3, %v922_v35 }
 0x382   : > { %2253 = vmatpush3.xpose.msk.msra.mxu1 %vm807_vm2, %v1013_v16  ;;  %2258 = vmatprep.mubr.msk.f32.mxu1 %vm807_vm2, %v1005_v28 }
 0x383   : > { %2254 = vmatprep.subr.msk.mxu1 %vm807_vm2, %v3186_v2 }
 0x386   : > { %2255 = vmatpush3.xpose.msk.msra.mxu1 %vm807_vm2, %v3186_v2 }
 0x387   : > { %2256 = vmatprep.subr.msk.mxu1 %vm807_vm2, %v1009_v27 }
 0x38a   : > { %2257 = vmatpush3.xpose.msk.msra.mxu1 %vm807_vm2, %v1009_v27 }
 0x38d   : > { %2259 = vmatmul.mubr.msk.f32.vlgmr.msra.gmra.mxu1 %vm807_vm2, %v1007_v18 }
 0x440   : > { %v2278_v37 = vpop.f32.mrf.mxu0 }
 0x441   : > { %v3228_v36 = vpop.f32.mrf.mxu1  ;;  %v1312_v49 = vmul.f32 0.17677669, %v2278_v37 }
 0x442   : > { %v1302_v41 = vpop.f32.mrf.mxu0 }
 0x443   : > { %v3230_v38 = vpop.f32.mrf.mxu1  ;;  %v1311_v46 = vmul.f32 0.17677669, %v1302_v41  ;;  %v1316_v52 = vsel %vm900_vm3, %v1312_v49, -inf }
 0x445   : > { %v1313_v51 = vsel %vm900_vm3, %v1311_v46, -inf }
 0x44d   : > { %v2260_v39 = vpop.f32.mrf.mxu1 }
 0x44e   : > { %v1100_v40 = vmul.f32 0.17677669, %v2260_v39 }
 0x44f   : > { %v1090_v42 = vpop.f32.mrf.mxu1 }
 0x450   : > { %v1099_v43 = vmul.f32 0.17677669, %v1090_v42  ;;  %v1104_v44 = vsel %vm900_vm3, %v1100_v40, -inf }
 0x451   : > { %1105 = vmax.xlane.f32.xlu1 %v1104_v44 }
 0x452   : > { %v1101_v47 = vsel %vm900_vm3, %v1099_v43, -inf }
 0x453   : > { %1102 = vmax.xlane.f32.xlu0 %v1101_v47 }
 0x457   : > { %1314 = vmax.xlane.f32.xlu0 %v1313_v51 }
 0x45b   : > { %1317 = vmax.xlane.f32.xlu0 %v1316_v52 }
 0x4da   : > { %v1106_v7 = vpop.xlane.xlu1 %1105 }
 0x4db   : > { %v1108_v8 = vsub.f32 %v1100_v40, %v1106_v7 }
 0x4dc   : > { %v1103_v53 = vpop.xlane.xlu0 %1102 }
 0x4dd   : > { %v1107_v5 = vsub.f32 %v1099_v43, %v1103_v53  ;;  %v1111_v9 = vmul.f32 1.442695, %v1108_v8 }
 0x4df   : > { %v1109_v6 = vmul.f32 1.442695, %v1107_v5 }
 0x4e0   : > { %v1315_v56 = vpop.xlane.xlu0 %1314 }
 0x4e1   : > { %v1319_v57 = vsub.f32 %v1311_v46, %v1315_v56 }
 0x4e3   : > { %v1321_v58 = vmul.f32 1.442695, %v1319_v57 }
 0x4e4   : > { %v1318_v59 = vpop.xlane.xlu0 %1317 }
 0x4e5   : > { %2491 = vpow2.f32 %v1321_v58  ;;  %v1320_v60 = vsub.f32 %v1312_v49, %v1318_v59 }
 0x4e7   : > { %v1323_v61 = vmul.f32 1.442695, %v1320_v60 }
 0x4e9   : > { %2493 = vpow2.f32 %v1323_v61 }
 0x4ea   : > { %2495 = vpow2.f32 %v1109_v6 }
 0x4eb   : > { %2497 = vpow2.f32 %v1111_v9  ;;  %v1681_v9 = vld [vmem:[#allocation15 + $0x78] sm:$0xff] }
 0x4f2   : > { %v2492_v0 = vpop.eup %2491 }
 0x4f3   : > { %v1325_v2 = vsel %vm900_vm3, %v2492_v0, 0.0 }
 0x4f4   : > { %1326 = vadd.xlane.f32.xlu0 %v1325_v2 }
 0x4f6   : > { %v3237_v3 = vpop.eup %2493 }
 0x4f7   : > { %v1328_v4 = vsel %vm900_vm3, %v3237_v3, 0.0  ;;  %v2496_v10 = vpop.eup %2495 }
 0x4f8   : > { %1329 = vadd.xlane.f32.xlu1 %v1328_v4  ;;  %v1113_v11 = vsel %vm900_vm3, %v2496_v10, 0.0  ;;  %v2498_v12 = vpop.eup %2497 }
 0x4f9   : > { %v1116_v13 = vsel %vm900_vm3, %v2498_v12, 0.0 }
 0x509   : > { %1128 = vrot.lane.b32.xlu1 %v3174_v62, %s2812_s14 }
 0x50a   : > { %1130 = vrot.lane.b32.xlu0 %v3176_v63, %s2812_s14 }
 0x50d   : > { %1126 = vrot.lane.b32.xlu1 %v3178_v1, %s2812_s14 }
 0x511   : > { %1339 = vrot.lane.b32.xlu1 %v3176_v63, %s2813_s1 }
 0x529   : > { %1114 = vadd.xlane.f32.xlu0 %v1113_v11  ;;  %v1678_v11 = vld [vmem:[#allocation15 + $0x60] sm:$0xff] }
 0x535   : > { %1117 = vadd.xlane.f32.xlu1 %v1116_v13  ;;  %v1676_v13 = vld [vmem:[#allocation15 + $0x50] sm:$0xff] }
 0x53f   : > { %1337 = vrot.lane.b32.xlu0 %v3174_v62, %s2813_s1 }
 0x543   : > { %1433 = vrot.lane.b32.xlu0 %v3142_v48, %s2814_s29 }
 0x546   : > { %1335 = vrot.lane.b32.xlu1 %v3178_v1, %s2813_s1 }
 0x547   : > { %1429 = vrot.lane.b32.xlu0 %v3152_v50, %s2814_s29 }
 0x54a   : > { %1431 = vrot.lane.b32.xlu1 %v3138_v45, %s2814_s29 }
 0x54b   : > { %1427 = vrot.lane.b32.xlu0 %v3165_v55, %s2814_s29 }
 0x54e   : > { %1425 = vrot.lane.b32.xlu1 %v3161_v54, %s2814_s29 }
 0x57d   : > { %v1327_v14 = vpop.xlane.xlu0 %1326 }
 0x581   : > { %v1330_v15 = vpop.xlane.xlu1 %1329  ;;  %v1131_v16 = vpop.permute.xlu0 %1130 }
 0x582   : > { %2261 = vmatprep.subr.mxu1 %v1131_v16 }
 0x583   : > { %2262 = vmatpush3.msra.mxu1 %v1131_v16  ;;  %v1673_v16 = vld [vmem:[#allocation15 + $0x38] sm:$0xff] }
 0x585   : > { %v1129_v48 = vpop.permute.xlu1 %1128 }
 0x586   : > { %2263 = vmatprep.subr.mxu1 %v1129_v48 }
 0x587   : > { %2264 = vmatpush3.msra.mxu1 %v1129_v48  ;;  %v1672_v48 = vld [vmem:[#allocation15 + $0x30] sm:$0xff] }
 0x589   : > { %v1127_v17 = vpop.permute.xlu1 %1126 }
 0x58a   : > { %2265 = vmatprep.subr.mxu1 %v1127_v17 }
 0x58b   : > { %2266 = vmatpush3.msra.mxu1 %v1127_v17  ;;  %v1671_v17 = vld [vmem:[#allocation15 + $0x28] sm:$0xff] }
 0x58d   : > { %v1340_v50 = vpop.permute.xlu1 %1339 }
 0x58e   : > { %2279 = vmatprep.subr.mxu1 %v1340_v50 }
 0x5b2   : > { %v1115_v45 = vpop.xlane.xlu0 %1114 }
 0x5b3   : > { %2499 = vrcp.f32 %v1115_v45  ;;  %v1669_v45 = vld [vmem:[#allocation15 + $0x18] sm:$0xff] }
 0x5b4   : > { %2501 = vrcp.f32 %v1327_v14  ;;  %v1675_v14 = vld [vmem:[#allocation15 + $0x48] sm:$0xff] }
 0x5b6   : > { %v1338_v24 = vpop.permute.xlu0 %1337 }
 0x5ba   : > { %v1434_v29 = vpop.permute.xlu0 %1433 }
 0x5be   : > { %v1118_v55 = vpop.xlane.xlu1 %1117  ;;  %v1430_v31 = vpop.permute.xlu0 %1429 }
 0x5bf   : > { %2503 = vrcp.f32 %v1118_v55  ;;  %v1668_v55 = vld [vmem:[#allocation15 + $0x10] sm:$0xff] }
 0x5c0   : > { %v2500_v18 = vpop.eup %2499  ;;  %2505 = vrcp.f32 %v1330_v15  ;;  %v1674_v15 = vld [vmem:[#allocation15 + $0x40] sm:$0xff] }
 0x5c1   : > { %v1121_v54 = vmul.f32 %v2500_v18, %v2496_v10  ;;  %v2502_v21 = vpop.eup %2501  ;;  %v1679_v10 = vld [vmem:[#allocation15 + $0x68] sm:$0xff] }
 0x5c2   : > { %v1336_v20 = vpop.permute.xlu1 %1335  ;;  %v1333_v25 = vmul.f32 %v2502_v21, %v2492_v0  ;;  %v1428_v32 = vpop.permute.xlu0 %1427  ;;  %v1667_v18 = vld [vmem:[#allocation15 + $0x8] sm:$0xff] }
 0x5c3   : > { %2267 = vmatprep.mubr.msk.f32.mxu1 %vm900_vm3, %v1121_v54  ;;  %v1666_v54 = vld [vmem:[#allocation15] sm:$0xff] }
 0x5c6   : > { %v1432_v26 = vpop.permute.xlu1 %1431 }
 0x5ca   : > { %v1426_v30 = vpop.permute.xlu1 %1425 }
 0x5cc   : > { %v2504_v22 = vpop.eup %2503 }
 0x5cd   : > { %v1122_v23 = vmul.f32 %v2504_v22, %v2498_v12  ;;  %v2506_v27 = vpop.eup %2505  ;;  %v1677_v12 = vld [vmem:[#allocation15 + $0x58] sm:$0xff] }
 0x5ce   : > { %v1334_v28 = vmul.f32 %v2506_v27, %v3237_v3 }
 0x5cf   : > { %2268 = vmatmul.mubr.msk.f32.vlgmr.msra.gmra.mxu1 %vm900_vm3, %v1122_v23 }
 0x5d0   : > { %2280 = vmatpush3.msra.mxu1 %v1340_v50  ;;  %2285 = vmatprep.mubr.msk.f32.mxu1 %vm900_vm3, %v1333_v25  ;;  %v1670_v50 = vld [vmem:[#allocation15 + $0x20] sm:$0xff] }
 0x5d1   : > { %2281 = vmatprep.subr.mxu1 %v1338_v24 }
 0x5d2   : > { %2282 = vmatpush3.msra.mxu1 %v1338_v24 }
 0x5d3   : > { %2283 = vmatprep.subr.mxu1 %v1336_v20 }
 0x5d4   : > { %2284 = vmatpush3.msra.mxu1 %v1336_v20 }
 0x5d5   : > { %2286 = vmatmul.mubr.msk.f32.vlgmr.msra.gmra.mxu1 %vm900_vm3, %v1334_v28  ;;  %2288 = vmatprep.subr.msk.mxu1 %vm807_vm2, %v1434_v29 }
 0x5d6   : > { %2289 = vmatpush3.xpose.msk.msra.mxu1 %vm807_vm2, %v1434_v29  ;;  %2294 = vmatprep.mubr.msk.f32.mxu1 %vm807_vm2, %v1426_v30 }
 0x5d7   : > { %2290 = vmatprep.subr.msk.mxu1 %vm807_vm2, %v1432_v26 }
 0x5da   : > { %2291 = vmatpush3.xpose.msk.msra.mxu1 %vm807_vm2, %v1432_v26 }
 0x5db   : > { %2292 = vmatprep.subr.msk.mxu1 %vm807_vm2, %v1430_v31 }
 0x5de   : > { %2293 = vmatpush3.xpose.msk.msra.mxu1 %vm807_vm2, %v1430_v31 }
 0x5e1   : > { %2295 = vmatmul.mubr.msk.f32.vlgmr.msra.gmra.mxu1 %vm807_vm2, %v1428_v32 }
 0x68f   : > { %v2269_v33 = vpop.f32.mrf.mxu1 }
 0x691   : > { %v1207_v35 = vpop.f32.mrf.mxu1 }
 0x692   : > { %v2468_v47 = vpack.i.bf16 %v2269_v33, %v1207_v35 }
 0x695   : > { %v2287_v37 = vpop.f32.mrf.mxu1 }
 0x697   : > { %v1416_v39 = vpop.f32.mrf.mxu1 }
 0x698   : > { %v2473_v49 = vpack.i.bf16 %v2287_v37, %v1416_v39 }
 0x6a1   : > { %v2296_v40 = vpop.f32.mrf.mxu1 }
 0x6a2   : > { %v1521_v41 = vmul.f32 0.17677669, %v2296_v40 }
 0x6a3   : > { %v1511_v42 = vpop.f32.mrf.mxu1 }
 0x6a4   : > { %v1520_v43 = vmul.f32 0.17677669, %v1511_v42  ;;  %v1525_v44 = vsel %vm900_vm3, %v1521_v41, -inf }
 0x6a5   : > { %1526 = vmax.xlane.f32.xlu0 %v1525_v44 }
 0x6a6   : > { %v1522_v46 = vsel %vm900_vm3, %v1520_v43, -inf }
 0x6a7   : > { %1523 = vmax.xlane.f32.xlu1 %v1522_v46 }
 0x6b8   : > { %1548 = vrot.lane.b32.xlu1 %v3176_v63, %s2814_s29 }
 0x6bc   : > { %1544 = vrot.lane.b32.xlu1 %v3178_v1, %s2814_s29 }
 0x6c0   : > { %2469 = vrot.lane.b32.xlu1 %v2468_v47, %s2814_s29 }
 0x6c4   : > { %2474 = vrot.lane.b32.xlu1 %v2473_v49, %s2813_s1 }
 0x72e   : > { %v1527_v51 = vpop.xlane.xlu0 %1526 }
 0x72f   : > { %v1529_v52 = vsub.f32 %v1521_v41, %v1527_v51  ;;  %v2041_v41 = vld [vmem:[%s3373_s7 + $0x3] ss:$0 sm:$0xff] }
 0x730   : > { %v1524_v53 = vpop.xlane.xlu1 %1523 }
 0x731   : > { %v1532_v56 = vmul.f32 1.442695, %v1529_v52  ;;  %v1528_v57 = vsub.f32 %v1520_v43, %v1524_v53 }
 0x733   : > { %2507 = vpow2.f32 %v1532_v56  ;;  %v1530_v58 = vmul.f32 1.442695, %v1528_v57 }
 0x734   : > { %v1549_v59 = vpop.permute.xlu1 %1548 }
 0x735   : > { %2509 = vpow2.f32 %v1530_v58  ;;  %2297 = vmatprep.subr.mxu0 %v1549_v59 }
 0x736   : > { %2298 = vmatpush3.msra.mxu0 %v1549_v59 }
 0x738   : > { %v1545_v4 = vpop.permute.xlu1 %1544 }
 0x73c   : > { %v2470_v23 = vpop.permute.xlu1 %2469 }
 0x73d   : > { %v2472_v25 = vunpack.i.h.bf16 %v2470_v23  ;;  %v2471_v26 = vunpack.i.l.bf16 %v2470_v23 }
 0x73f   : > { %v1659_v30 = vsel %vm807_vm2, %v3228_v36, %v2472_v25  ;;  %v1658_v33 = vsel %vm807_vm2, %v3230_v38, %v2471_v26 }
 0x740   : > { %v2508_v63 = vpop.eup %2507  ;;  %v2475_v24 = vpop.permute.xlu1 %2474 }
 0x741   : > { %v1537_v1 = vsel %vm900_vm3, %v2508_v63, 0.0  ;;  %v2477_v27 = vunpack.i.h.bf16 %v2475_v24  ;;  %v2476_v28 = vunpack.i.l.bf16 %v2475_v24 }
 0x742   : > { %v2510_v60 = vpop.eup %2509  ;;  %1538 = vadd.xlane.f32.xlu0 %v1537_v1 }
 0x743   : > { %v1534_v61 = vsel %vm900_vm3, %v2510_v60, 0.0  ;;  %v1661_v35 = vsel %vm504_vm1, %v1658_v33, %v2476_v28  ;;  %v1662_v37 = vsel %vm504_vm1, %v1659_v30, %v2477_v27 }
 0x746   : > { %1535 = vadd.xlane.f32.xlu0 %v1534_v61 }
 0x75c   : > { %1546 = vrot.lane.b32.xlu0 %v3174_v62, %s2814_s29  ;;  %v1680_v62 = vld [vmem:[#allocation15 + $0x70] sm:$0xff] }
 0x7cb   : > { %v1539_v0 = vpop.xlane.xlu0 %1538 }
 0x7cc   : > { %2511 = vrcp.f32 %v1539_v0  ;;  %v2042_v0 = vld [vmem:[%s3373_s7 + $0x4] ss:$0 sm:$0xff] }
 0x7cf   : > { %v1536_v2 = vpop.xlane.xlu0 %1535 }
 0x7d0   : > { %2513 = vrcp.f32 %v1536_v2 }
 0x7d3   : > { %v1547_v3 = vpop.permute.xlu0 %1546 }
 0x7d4   : > { %2299 = vmatprep.subr.mxu0 %v1547_v3 }
 0x7d5   : > { %2300 = vmatpush3.msra.mxu0 %v1547_v3  ;;  %v2043_v3 = vld [vmem:[%s3373_s7 + $0x5] ss:$0 sm:$0xff] }
 0x7d6   : > { %2301 = vmatprep.subr.mxu0 %v1545_v4 }
 0x7d7   : > { %2302 = vmatpush3.msra.mxu0 %v1545_v4 }
 0x7d8   : > { %2306 = vmatprep.subr.mxu0 %v1681_v9 }
 0x7d9   : > { %v2512_v5 = vpop.eup %2511 }
 0x7da   : > { %v1543_v8 = vmul.f32 %v2512_v5, %v2508_v63 }
 0x7dd   : > { %v2514_v6 = vpop.eup %2513 }
 0x7de   : > { %v1542_v7 = vmul.f32 %v2514_v6, %v2510_v60 }
 0x7e0   : > { %2303 = vmatprep.mubr.msk.f32.mxu0 %vm900_vm3, %v1542_v7 }
 0x7e1   : > { %2304 = vmatmul.mubr.msk.f32.vlgmr.msra.gmra.mxu0 %vm900_vm3, %v1543_v8 }
 0x7e2   : > { %2307 = vmatpush3.msra.mxu0 %v1681_v9 }
 0x7e3   : > { %2308 = vmatprep.subr.mxu0 %v1680_v62 }
 0x7e4   : > { %2309 = vmatpush3.msra.mxu0 %v1680_v62 }
 0x7e5   : > { %2310 = vmatprep.subr.mxu0 %v1679_v10 }
 0x7e6   : > { %2311 = vmatpush3.msra.mxu0 %v1679_v10 }
 0x7e7   : > { %2312 = vmatprep.subr.mxu0 %v1678_v11 }
 0x7e8   : > { %2313 = vmatpush3.msra.mxu0 %v1678_v11 }
 0x7e9   : > { %2314 = vmatprep.subr.mxu0 %v1677_v12 }
 0x7ea   : > { %2315 = vmatpush3.msra.mxu0 %v1677_v12 }
 0x7eb   : > { %2316 = vmatprep.subr.mxu0 %v1676_v13 }
 0x7ec   : > { %2317 = vmatpush3.msra.mxu0 %v1676_v13 }
 0x7ed   : > { %2318 = vmatprep.subr.mxu0 %v1675_v14 }
 0x7ee   : > { %2319 = vmatpush3.msra.mxu0 %v1675_v14 }
 0x7ef   : > { %2320 = vmatprep.subr.mxu0 %v1674_v15 }
 0x7f0   : > { %2321 = vmatpush3.msra.mxu0 %v1674_v15 }
 0x7f1   : > { %2322 = vmatprep.subr.mxu0 %v1673_v16 }
 0x7f2   : > { %2323 = vmatpush3.msra.mxu0 %v1673_v16 }
 0x7f3   : > { %2324 = vmatprep.subr.mxu0 %v1672_v48 }
 0x7f4   : > { %2325 = vmatpush3.msra.mxu0 %v1672_v48 }
 0x7f5   : > { %2326 = vmatprep.subr.mxu0 %v1671_v17 }
 0x7f6   : > { %2327 = vmatpush3.msra.mxu0 %v1671_v17 }
 0x7f7   : > { %2328 = vmatprep.subr.mxu0 %v1670_v50 }
 0x7f8   : > { %2329 = vmatpush3.msra.mxu0 %v1670_v50 }
 0x7f9   : > { %2330 = vmatprep.subr.mxu0 %v1669_v45 }
 0x7fa   : > { %2331 = vmatpush3.msra.mxu0 %v1669_v45 }
 0x7fb   : > { %2332 = vmatprep.subr.mxu0 %v1668_v55 }
 0x7fc   : > { %2333 = vmatpush3.msra.mxu0 %v1668_v55 }
 0x7fd   : > { %2334 = vmatprep.subr.mxu0 %v1667_v18 }
 0x7fe   : > { %2335 = vmatpush3.msra.mxu0 %v1667_v18 }
 0x7ff   : > { %2336 = vmatprep.subr.mxu0 %v1666_v54 }
 0x800   : > { %2337 = vmatpush3.msra.mxu0 %v1666_v54 }
 0x8a1   : > { %v2305_v20 = vpop.f32.mrf.mxu0 }
 0x8a3   : > { %v1625_v21 = vpop.f32.mrf.mxu0 }
 0x8a4   : > { %v2478_v22 = vpack.i.bf16 %v2305_v20, %v1625_v21 }
 0x8a6   : > { %2479 = vrot.lane.b32.xlu0 %v2478_v22, %s2812_s14  ;;  %s2713_s14 = scalar_lea.vmem %s2712_s3, 512 }
 0x8a7   : > { %p2715_p11 = scmp.lt.s32.totalorder %s2713_s14, %s2707_s13 }
 0x8a9   : > { %p2716_p9 = por %p2715_p11, %p2714_p6 }
 0x8ab   : > { %p2717_p13 = pnand %p2716_p9, %p2710_p3 }
 0x918   : > { %v2480_v29 = vpop.permute.xlu0 %2479 }
 0x919   : > { %v2482_v31 = vunpack.i.h.bf16 %v2480_v29  ;;  %v2481_v32 = vunpack.i.l.bf16 %v2480_v29 }
 0x91b   : > { %v1664_v39 = vsel %vm1663_vm4, %v1661_v35, %v2481_v32  ;;  %v1665_v40 = vsel %vm1663_vm4, %v1662_v37, %v2482_v31 }
 0x91c   : > { %2338 = vmatprep.mubr.f32.mxu0 %v1664_v39 }
 0x91d   : > { %2339 = vmatmul.mubr.f32.vlgmr.msra.gmra.mxu0 %v1665_v40 }
 0x9dd   : > { %v2340_v42 = vpop.f32.mrf.mxu0 }
 0x9de   : > { %v1758_v43 = vadd.f32 %v2340_v42, %v2041_v41 }
 0x9df   : > { %v1752_v36 = vpop.f32.mrf.mxu0 }
 0x9e0   : > { %v1753_v44 = vadd.f32 %v2041_v41, %v1752_v36  ;;  %v1762_v46 = vadd.f32 %v1758_v43, %v3116_v34 }
 0x9e2   : > { %1765 = vadd.xlane.f32.xlu0 %v1762_v46  ;;  %v1761_v38 = vadd.f32 %v1753_v44, %v3099_v19 }
 0x9e4   : > { %1763 = vadd.xlane.f32.xlu1 %v1761_v38 }
 0xa6b   : > { %v1766_v47 = vpop.xlane.xlu0 %1765 }
 0xa6c   : > { %v1769_v51 = vmul.f32 0.0078125, %v1766_v47 }
 0xa6d   : > { %v1764_v49 = vpop.xlane.xlu1 %1763 }
 0xa6e   : > { %v1768_v52 = vmul.f32 0.0078125, %v1764_v49  ;;  %v1771_v56 = vsub.f32 %v1762_v46, %v1769_v51 }
 0xa70   : > { %v1770_v53 = vsub.f32 %v1761_v38, %v1768_v52  ;;  %v1773_v58 = vmul.f32 %v1771_v56, %v1771_v56 }
 0xa72   : > { %v1772_v57 = vmul.f32 %v1770_v53, %v1770_v53 }
 0xa74   : > { %1774 = vadd.xlane.f32.xlu0 %v1772_v57 }
 0xa78   : > { %1776 = vadd.xlane.f32.xlu0 %v1773_v58 }
 0xafd   : > { %v1775_v59 = vpop.xlane.xlu0 %1774 }
 0xafe   : > { %v1778_v63 = vmul.f32 0.0078125, %v1775_v59 }
 0xb00   : > { %v1780_v1 = vadd.f32 1e-05, %v1778_v63 }
 0xb01   : > { %v1777_v34 = vpop.xlane.xlu0 %1776 }
 0xb02   : > { %2515 = vrsqrt.f32 %v1780_v1  ;;  %v1779_v60 = vmul.f32 0.0078125, %v1777_v34 }
 0xb04   : > { %v1781_v19 = vadd.f32 1e-05, %v1779_v60 }
 0xb06   : > { %2517 = vrsqrt.f32 %v1781_v19 }
 0xb0f   : > { %v2516_v61 = vpop.eup %2515 }
 0xb10   : > { %v1784_v2 = vmul.f32 %v2516_v61, %v1770_v53 }
 0xb12   : > { %v1790_v4 = vmul.f32 %v2042_v0, %v1784_v2 }
 0xb13   : > { %v2518_v5 = vpop.eup %2517 }
 0xb14   : > { %v1796_v6 = vadd.f32 %v2043_v3, %v1790_v4  ;;  %v1785_v7 = vmul.f32 %v2518_v5, %v1771_v56 }
 0xb16   : > { %v1791_v8 = vmul.f32 %v2042_v0, %v1785_v7  ;;  %1798 = vst [vmem:[%s476_s15] sm:$0xff] %v1796_v6 }
 0xb18   : > { %v1797_v9 = vadd.f32 %v2043_v3, %v1791_v8 }
 0xb1a   : > { %1799 = vst [vmem:[%s476_s15 + $0x8] sm:$0xff] %v1797_v9 }
 0xb1b   : > { %2720 = shalt.err (!%p2717_p13)
}
 0xb1c   : > { %s2721_s1 = scalar_lea.hbm %s3316_s18, 256  ;;  %s2725_s16 = scalar_lea.hbm %s3374_s8, 512 }
 0xb1d   : > { %p2722_p0 = scmp.ne.s32.totalorder %s3316_s18, %s2721_s1  ;;  %p2726_p8 = scmp.lt.s32.totalorder %s3316_s18, %s3374_s8 }
 0xb1e   : > { %p2727_p12 = scmp.lt.s32.totalorder %s2725_s16, %s2721_s1 }
 0xb1f   : > { %p2723_p10 = pnand %p2722_p0, %p2960_p7 }
 0xb20   : > { %p2728_p5 = por %p2727_p12, %p2726_p8 }
 0xb21   : > { %p2724_p1 = pneg %p2723_p10 }
 0xb23   : > { %p2729_p4 = pnand %p2728_p5, %p2724_p1 }
 0xb25   : > { %2732 = shalt.err (!%p2729_p4)
}
 0xb26   : > { %s2816_s12 = smov 128   ;;  %s2817_s23 = smov 8  }
 0xb27   : > { %2368 = dma.vmem_to_hbm [thread:$0]  (%p2960_p7), %s3318_s24, 256, %s3316_s18, %s1801_s11, %s2816_s12, %s2816_s12, %s2817_s23  }
 0xb28 PF: > { %s3424_s6 = sld [smem:[#allocation22_spill]] }
 0xb29   : > { %s3425_s10 = sld [smem:[#allocation25_spill]] }
 0xb2a   : > { %s3426_s26 = sld [smem:[#allocation24_spill]] }
 0xb2e   : > { %s1831_s27 = sand.u32 1, %s3424_s6  }
 0xb2f   : > { %p3427_p2 = scmp.ne.s32.totalorder %s3425_s10, 0  ;;  %s1832_s25 = scalar_lea.sflag [#allocation6], %s1831_s27 }
 0xb30   : > { %p3428_p3 = scmp.ge.s32.totalorder %s3426_s26, 2 }
 0xb32   : > { %p2394_p6 = pnand %p3428_p3, %p3427_p2 }
 0xb34   : > { %p2395_p11 = pneg %p2394_p6 }
 0xb36   : > { %2774 = dma.done.wait (%p2395_p11), %s1832_s25, 256  }
 0xb37   : > { %2776 = vsyncadd (%p2395_p11), %s1832_s25, 4294967040  ;;  %s29_s10 = sadd.s32 1, %s3426_s26   ;;  %s3429_s15 = sld [smem:[#allocation23_spill]] }
 0xb38   : > { %p26_p9 = scmp.ge.s32.totalorder %s29_s10, 4   ;;  %s3430_s29 = sld [smem:[#allocation27_spill]] }
 0xb39   : > { %s3431_s21 = sld [smem:[#allocation26_spill]]  ;;  %s3432_s27 = smov %s2783_s28 }
 0xb3a   : > { %s3434_s30 = smov %s2795_s9 }
 0xb3b   :  { %28 = sbr.rel (!%p26_p9) target bundleno = 16 (0x10), region = 141 }
 0xb3d   : > { %s3433_s28 = smov %s3429_s15 }
 0xb3f   : > { %s3435_s9 = smov %s3431_s21 }
 0xb40   :  { %1837 = vsyncpa [#allocation5], 1 }
 0xb41   :  { %1839 = vsyncpa [#allocation5 + $0x1], 1 }
 0xb42   :  { %1840 = vsyncpa [#allocation8], 1 }
 0xb43   :  { %1842 = vsyncpa [#allocation8 + $0x1], 1 }
 0xb44   :  { %1843 = vsyncpa [#allocation11], 1 }
 0xb45   :  { %1844 = vsyncpa [#allocation14], 1 }
 0xb46   :  { %1845 = vsyncpa [#allocation6], 1 }
 0xb47   :  { %1847 = vsyncpa [#allocation6 + $0x1], 1 }

</bundles_post_ra>
